<compile_context>
chip_gen: v7x
topology: tpu7x:2x2x1
jax: 0.10.0
libtpu: 0.0.40
codegen_flags: <defaults>
</compile_context>

<pallas_src>
import math
import functools

import jax
import jax.numpy as jnp
from jax.experimental import pallas as pl
from jax.experimental.pallas import tpu as pltpu


def _vmem_limit_bytes(block_shapes, itemsize=4):
    """Scoped-VMEM budget: ~2x per-step block residency + headroom, clamped."""
    per_step = sum(math.prod(s) for s in block_shapes) * itemsize
    return int(min(max(2 * per_step + (8 << 20), 16 << 20), 48 << 20))


# ---------------------------------------------------------------------------
# Fused decoder STACK kernel: one pallas_call, grid over layers ("arbitrary"),
# x carried across layers in VMEM scratch.
# ---------------------------------------------------------------------------

def _decoder_stack_kernel(
    # activations (grid-invariant blocks)
    x_ref, enc_ref, bias_ref,
    # per-layer self-attention params
    wqkv_s_ref, bqkv_s_ref, wo_s_ref, bo_s_ref, ln1_g_ref, ln1_b_ref,
    # per-layer cross-attention params
    wq_c_ref, bq_c_ref, wkv_c_ref, bkv_c_ref, wo_c_ref, bo_c_ref,
    ln2_g_ref, ln2_b_ref,
    # per-layer feed-forward params
    w1_ref, b1_ref, w2_ref, b2_ref,
    # outputs
    o_ref, state_ref,
    # scratch
    x_carry, z_buf,
    *, nheads, eps):
    B, S, D = x_ref.shape
    Se = enc_ref.shape[1]
    dk = D // nheads
    scale = 1.0 / math.sqrt(dk)
    layer = pl.program_id(0)

    # ---- carry init: layer 0 input is the embedded sequence ---------------
    @pl.when(layer == 0)
    def _():
        x_carry[...] = x_ref[...].reshape(B * S, D)

    x2 = x_carry[...]                              # (B*S, D) layer input
    state_ref[...] = x2.reshape(B, S, D)           # decoder_state[layer] = x

    enc2 = enc_ref[...].reshape(B * Se, D)
    enc_bias = bias_ref[...]                       # (B, S, Se) additive bias

    def mha(q2, k2, v2, kv_len, bias_or_none):
        # TODO(synk): reference calls an undefined `self_attention` free
        # function; standard masked softmax attention is assumed.
        q3 = q2.reshape(B, S, D) * scale           # scale folded into q once
        k3 = k2.reshape(B, kv_len, D)
        v3 = v2.reshape(B, kv_len, D)
        for h in range(nheads):                    # small static unroll
            lo = h * dk
            s = jnp.einsum('bqd,bkd->bqk',
                           q3[:, :, lo:lo + dk], k3[:, :, lo:lo + dk],
                           preferred_element_type=jnp.float32)
            if bias_or_none is not None:
                s = s + bias_or_none               # single VPU add, no select
            s = s - jnp.max(s, axis=-1, keepdims=True)
            p = jnp.exp(s)
            p = p * pl.reciprocal(jnp.sum(p, axis=-1, keepdims=True),
                                  approx=True)
            # write head output straight into VMEM scratch (no lane concat)
            z_buf[:, :, lo:lo + dk] = jnp.einsum(
                'bqk,bkd->bqd', p, v3[:, :, lo:lo + dk],
                preferred_element_type=jnp.float32)
        return z_buf[...].reshape(B * S, D)

    def add_norm(res, sub, g, b):
        # AddandNorm: layernorm(x + dropout(sublayer)); dropout == identity.
        z = res + sub
        n = z.shape[-1]
        mean = jnp.mean(z, axis=-1, keepdims=True)
        var = jnp.sum((z - mean) ** 2, axis=-1, keepdims=True) / (n - 1)
        std = jnp.sqrt(var)
        # Faithful to reference LayerNorm: x_hat = x - (mean / (std + eps))
        z_hat = z - mean / (std + eps)
        return g * z_hat + b

    # ---- 1) self attention (eval / time_step==0 -> mask is None) ----------
    qkv = jnp.dot(x2, wqkv_s_ref[...],
                  preferred_element_type=jnp.float32) + bqkv_s_ref[...]
    z_s = mha(qkv[:, :D], qkv[:, D:2 * D], qkv[:, 2 * D:], S, None)
    attn1 = jnp.dot(z_s, wo_s_ref[...],
                    preferred_element_type=jnp.float32) + bo_s_ref[...]
    a1 = add_norm(x2, attn1, ln1_g_ref[...], ln1_b_ref[...])

    # ---- 2) cross attention (query = a1, key/value = encoder output) ------
    q_c = jnp.dot(a1, wq_c_ref[...],
                  preferred_element_type=jnp.float32) + bq_c_ref[...]
    kv_c = jnp.dot(enc2, wkv_c_ref[...],
                   preferred_element_type=jnp.float32) + bkv_c_ref[...]
    z_c = mha(q_c, kv_c[:, :D], kv_c[:, D:], Se, enc_bias)
    attn2 = jnp.dot(z_c, wo_c_ref[...],
                    preferred_element_type=jnp.float32) + bo_c_ref[...]
    a2 = add_norm(a1, attn2, ln2_g_ref[...], ln2_b_ref[...])

    # ---- 3) pointwise FFN + Add&Norm ---------------------------------------
    # TODO(synk): PointwiseFeedForward is referenced but not defined in the
    # source; standard Linear->ReLU->Dropout(identity)->Linear is assumed.
    h = jnp.dot(a2, w1_ref[...], preferred_element_type=jnp.float32) + b1_ref[...]
    h = jnp.maximum(h, 0.0)
    f = jnp.dot(h, w2_ref[...], preferred_element_type=jnp.float32) + b2_ref[...]
    # Reference (bug kept): third residual reuses add_norm2's parameters.
    a3 = add_norm(a2, f, ln2_g_ref[...], ln2_b_ref[...])

    x_carry[...] = a3                               # carry to next layer
    o_ref[...] = a3.reshape(B, S, D).astype(o_ref.dtype)


def decoder_stack(x, encoder_output, enc_bias, stacked, nheads, eps=1e-09):
    """Run all decoder layers in one fused pallas_call.

    x:(B,S,D), encoder_output:(B,Se,D), enc_bias:(B,S,Se) additive mask bias,
    stacked: list of per-layer-stacked weight arrays (leading dim = nlayers).
    Returns (y:(B,S,D), state:(L,B,S,D)).
    """
    B, S, D = x.shape
    Se = encoder_output.shape[1]
    L = stacked[0].shape[0]
    DL = stacked[14].shape[2]          # ffn_w1: (L, D, DL)

    kernel = functools.partial(_decoder_stack_kernel, nheads=nheads, eps=eps)

    def wspec(s1, s2):                 # per-layer weight block (prefetched)
        return pl.BlockSpec((pl.Squeezed(), s1, s2), lambda l: (l, 0, 0))

    in_specs = [
        pl.BlockSpec((B, S, D), lambda l: (0, 0, 0)),    # x (fetched once)
        pl.BlockSpec((B, Se, D), lambda l: (0, 0, 0)),   # encoder_output
        pl.BlockSpec((B, S, Se), lambda l: (0, 0, 0)),   # additive mask bias
        wspec(D, 3 * D), wspec(1, 3 * D),                # wqkv_self, bqkv_self
        wspec(D, D), wspec(1, D),                        # wo_self, bo_self
        wspec(1, D), wspec(1, D),                        # ln1_g, ln1_b
        wspec(D, D), wspec(1, D),                        # wq_cross, bq_cross
        wspec(D, 2 * D), wspec(1, 2 * D),                # wkv_cross, bkv_cross
        wspec(D, D), wspec(1, D),                        # wo_cross, bo_cross
        wspec(1, D), wspec(1, D),                        # ln2_g, ln2_b
        wspec(D, DL), wspec(1, DL),                      # ffn_w1, ffn_b1
        wspec(DL, D), wspec(1, D),                       # ffn_w2, ffn_b2
    ]

    blocks = [
        (B, S, D), (B, Se, D), (B, S, Se),
        (D, 3 * D), (1, 3 * D), (D, D), (1, D), (1, D), (1, D),
        (D, D), (1, D), (D, 2 * D), (1, 2 * D), (D, D), (1, D), (1, D), (1, D),
        (D, DL), (1, DL), (DL, D), (1, D),
        (B, S, D), (B, S, D),          # outputs
        (B * S, D), (B, S, D),         # scratch
    ]

    return pl.pallas_call(
        kernel,
        out_shape=(jax.ShapeDtypeStruct((B, S, D), jnp.float32),
                   jax.ShapeDtypeStruct((L, B, S, D), jnp.float32)),
        grid=(L,),
        in_specs=in_specs,
        out_specs=(
            pl.BlockSpec((B, S, D), lambda l: (0, 0, 0)),
            pl.BlockSpec((pl.Squeezed(), B, S, D), lambda l: (l, 0, 0, 0)),
        ),
        scratch_shapes=[pltpu.VMEM((B * S, D), jnp.float32),   # x carry
                        pltpu.VMEM((B, S, D), jnp.float32)],   # head outputs
        compiler_params=pltpu.CompilerParams(
            dimension_semantics=("arbitrary",),   # sequential layer carry
            vmem_limit_bytes=_vmem_limit_bytes(blocks)),
    )(x, encoder_output, enc_bias, *stacked)


# ---------------------------------------------------------------------------
# Final vocab projection: lane-padded, N-tiled linear kernel
# ---------------------------------------------------------------------------

def _linear_kernel(x_ref, w_ref, b_ref, o_ref):
    y = jnp.dot(x_ref[...], w_ref[...], preferred_element_type=jnp.float32)
    o_ref[...] = (y + b_ref[...]).astype(o_ref.dtype)


def linear(x, w, b, tn=128):
    """y = x @ w + b with the N (vocab) dim padded to a multiple of 128 and
    tiled on a parallel grid (unmasked 128-lane output stores)."""
    M, K = x.shape
    N = w.shape[1]
    Np = pl.cdiv(N, tn) * tn
    if Np != N:
        w = jnp.pad(w, ((0, 0), (0, Np - N)))
        b = jnp.pad(b, (0, Np - N))
    blocks = [(M, K), (K, tn), (1, tn), (M, tn)]
    out = pl.pallas_call(
        _linear_kernel,
        out_shape=jax.ShapeDtypeStruct((M, Np), jnp.float32),
        grid=(Np // tn,),
        in_specs=[
            pl.BlockSpec((M, K), lambda j: (0, 0)),
            pl.BlockSpec((K, tn), lambda j: (0, j)),
            pl.BlockSpec((1, tn), lambda j: (0, j)),
        ],
        out_specs=pl.BlockSpec((M, tn), lambda j: (0, j)),
        compiler_params=pltpu.CompilerParams(
            dimension_semantics=("parallel",),
            vmem_limit_bytes=_vmem_limit_bytes(blocks)),
    )(x, w, b.reshape(1, Np))
    return out[:, :N]


# ---------------------------------------------------------------------------
# Decoder forward (JAX glue: embedding gather, positional add, weight stack)
# ---------------------------------------------------------------------------

def _stack_layer_params(layers):
    def stk(key, as_row=False):
        vals = [lp[key] for lp in layers]
        if as_row:
            vals = [v.reshape(1, -1) for v in vals]
        return jnp.stack(vals, axis=0)
    return [
        stk("wqkv_self"), stk("bqkv_self", True),
        stk("wo_self"), stk("bo_self", True),
        stk("ln1_g", True), stk("ln1_b", True),
        stk("wq_cross"), stk("bq_cross", True),
        stk("wkv_cross"), stk("bkv_cross", True),
        stk("wo_cross"), stk("bo_cross", True),
        stk("ln2_g", True), stk("ln2_b", True),
        stk("ffn_w1"), stk("ffn_b1", True),
        stk("ffn_w2"), stk("ffn_b2", True),
    ]


def decoder_forward(params, tokens, encoder_output, encoder_mask, decoder_state,
                    nheads):
    B, S = tokens.shape
    D = params["embed"].shape[1]
    L = len(params["layers"])
    # TODO(synk): embedding gather + scale + positional add kept as plain-JAX
    # glue (scalar-prefetch gather kernel not worthwhile at these sizes).
    emb = jnp.take(params["embed"], tokens, axis=0)            # (B,S,D)
    x = emb * math.sqrt(D) + params["pos"][:S][None, :, :]     # dropout = identity
    # Additive attention bias: 0 where valid, -1e9 where masked (f32).
    enc_bias = (encoder_mask - 1.0) * 1e9

    stacked = _stack_layer_params(params["layers"])
    y, state = decoder_stack(x, encoder_output, enc_bias, stacked, nheads)
    new_state = tuple(state[i] for i in range(L))              # decoder_state[i] = x_i

    logits = linear(y.reshape(B * S, D), params["dense_w"], params["dense_b"])
    return logits.reshape(B, S, -1), new_state


# ---------------------------------------------------------------------------
# Deterministic parameter initialization (fused QKV / KV layouts)
# ---------------------------------------------------------------------------

def init_linear(key, fan_in, fan_out):
    kw, kb = jax.random.split(key)
    bound = 1.0 / math.sqrt(fan_in)
    w = jax.random.uniform(kw, (fan_in, fan_out), jnp.float32, -bound, bound)
    b = jax.random.uniform(kb, (fan_out,), jnp.float32, -bound, bound)
    return w, b


def init_mha_fused(key, dmodel):
    """Wq/Wk/Wv concatenated -> one (D,3D) MXU matmul; Wkv for cross-attn."""
    kq, kk, kv, ko = jax.random.split(key, 4)
    wq, bq = init_linear(kq, dmodel, dmodel)
    wk, bk = init_linear(kk, dmodel, dmodel)
    wv, bv = init_linear(kv, dmodel, dmodel)
    wo, bo = init_linear(ko, dmodel, dmodel)
    return {
        "wqkv": jnp.concatenate([wq, wk, wv], axis=1),
        "bqkv": jnp.concatenate([bq, bk, bv], axis=0),
        "wq": wq, "bq": bq,
        "wkv": jnp.concatenate([wk, wv], axis=1),
        "bkv": jnp.concatenate([bk, bv], axis=0),
        "wo": wo, "bo": bo,
    }


def init_layer(key, dmodel, dlinear):
    k1, k2, k3, k4 = jax.random.split(key, 4)
    mha_s = init_mha_fused(k1, dmodel)
    mha_c = init_mha_fused(k2, dmodel)
    w1, b1 = init_linear(k3, dmodel, dlinear)
    w2, b2 = init_linear(k4, dlinear, dmodel)
    return {
        "wqkv_self": mha_s["wqkv"], "bqkv_self": mha_s["bqkv"],
        "wo_self": mha_s["wo"], "bo_self": mha_s["bo"],
        "wq_cross": mha_c["wq"], "bq_cross": mha_c["bq"],
        "wkv_cross": mha_c["wkv"], "bkv_cross": mha_c["bkv"],
        "wo_cross": mha_c["wo"], "bo_cross": mha_c["bo"],
        "ln1_g": jnp.ones((dmodel,), jnp.float32),
        "ln1_b": jnp.zeros((dmodel,), jnp.float32),
        "ln2_g": jnp.ones((dmodel,), jnp.float32),
        "ln2_b": jnp.zeros((dmodel,), jnp.float32),
        # ln3 params initialized but dead (reference reuses ln2 for residual 3).
        "ln3_g": jnp.ones((dmodel,), jnp.float32),
        "ln3_b": jnp.zeros((dmodel,), jnp.float32),
        "ffn_w1": w1, "ffn_b1": b1,
        "ffn_w2": w2, "ffn_b2": b2,
    }


def make_positional_table(maxlen, dmodel):
    # Faithful to reference PositionalEmbedding.__init__ (broadcast fixed).
    theta_num = jnp.arange(maxlen, dtype=jnp.float32)
    theta_den = jnp.power(10000.0,
                          jnp.arange(0, dmodel, 2, dtype=jnp.float32)) / dmodel
    theta = theta_num[:, None] / theta_den[None, :]
    P = jnp.zeros((maxlen, dmodel), jnp.float32)
    P = P.at[:, 0::2].set(jnp.sin(theta))
    P = P.at[:, 1::2].set(jnp.cos(theta))
    return P


def init_decoder(key, vocab, nlayers, dmodel, dlinear, maxlen=64):
    keys = jax.random.split(key, nlayers + 2)
    dense_w, dense_b = init_linear(keys[-1], dmodel, vocab)
    return {
        "embed": jax.random.normal(keys[-2], (vocab, dmodel), jnp.float32),
        "pos": make_positional_table(maxlen, dmodel),
        "layers": [init_layer(keys[i], dmodel, dlinear) for i in range(nlayers)],
        "dense_w": dense_w,
        "dense_b": dense_b,
    }


# ---------------------------------------------------------------------------

if __name__ == "__main__":
    B, S, S_ENC = 2, 8, 8
    VOCAB, DMODEL, NHEADS, DLINEAR, NLAYERS = 50, 32, 4, 64, 2

    root = jax.random.PRNGKey(0)
    k_params, k_tok, k_enc = jax.random.split(root, 3)

    params = init_decoder(k_params, VOCAB, NLAYERS, DMODEL, DLINEAR)

    tokens = jax.random.randint(k_tok, (B, S), 0, VOCAB, dtype=jnp.int32)
    encoder_output = jax.random.normal(k_enc, (B, S_ENC, DMODEL), jnp.float32)
    encoder_mask = jnp.ones((B, S, S_ENC), jnp.float32)      # all positions valid
    decoder_state = tuple(jnp.zeros((B, S, DMODEL), jnp.float32)
                          for _ in range(NLAYERS))

    fwd = jax.jit(decoder_forward, static_argnums=(5,))
    logits, new_state = fwd(params, tokens, encoder_output,
                            encoder_mask, decoder_state, NHEADS)
    jax.block_until_ready(logits)
    jax.block_until_ready(new_state)

    assert logits.shape == (B, S, VOCAB)
    assert len(new_state) == NLAYERS and new_state[0].shape == (B, S, DMODEL)
    assert bool(jnp.all(jnp.isfinite(logits)))
    print("KERNEL_OK")
</pallas_src>

<mosaic_0001>
module attributes {stable_mosaic.version = 11 : i64} {
  func.func @_linear_kernel(%arg0: i32, %arg1: memref<16x32xf32, #tpu.memory_space<vmem>>, %arg2: memref<32x128xf32, #tpu.memory_space<vmem>>, %arg3: memref<1x128xf32, #tpu.memory_space<vmem>>, %arg4: memref<16x128xf32, #tpu.memory_space<vmem>>) attributes {dimension_semantics = [#tpu.dimension_semantics<parallel>], iteration_bounds = array<i64: 1>, scalar_prefetch = 0 : i64, scratch_operands = 0 : i64, tpu.core_type = #tpu.core_type<tc>, window_params = [{pipeline_mode = #tpu.pipeline_mode<synchronous>, transform_indices = @transform_0, window_bounds = array<i64: 16, 32>}, {transform_indices = @transform_1, window_bounds = array<i64: 32, 128>}, {transform_indices = @transform_2, window_bounds = array<i64: 1, 128>}, {transform_indices = @transform_3, window_bounds = array<i64: 16, 128>}]} {
    %c0 = arith.constant 0 : index
    %c0_0 = arith.constant 0 : index
    %0 = vector.load %arg1[%c0, %c0_0] : memref<16x32xf32, #tpu.memory_space<vmem>>, vector<16x32xf32>
    %c0_1 = arith.constant 0 : index
    %c0_2 = arith.constant 0 : index
    %1 = vector.load %arg2[%c0_1, %c0_2] : memref<32x128xf32, #tpu.memory_space<vmem>>, vector<32x128xf32>
    %cst = arith.constant dense<0.000000e+00> : vector<16x128xf32>
    %2 = tpu.matmul %0, %1, %cst {dimension_numbers = #tpu.dot_dimension_numbers<[1], [0], [0], [1], [0, 0, 1, 1], [], []>} : vector<16x32xf32>, vector<32x128xf32>, vector<16x128xf32> -> vector<16x128xf32>
    %c0_3 = arith.constant 0 : index
    %c0_4 = arith.constant 0 : index
    %3 = vector.load %arg3[%c0_3, %c0_4] : memref<1x128xf32, #tpu.memory_space<vmem>>, vector<1x128xf32>
    %4 = vector.broadcast %3 : vector<1x128xf32> to vector<16x128xf32>
    %5 = arith.addf %2, %4 : vector<16x128xf32>
    %c0_5 = arith.constant 0 : index
    %c0_6 = arith.constant 0 : index
    %6 = vector.load %arg4[%c0_5, %c0_6] : memref<16x128xf32, #tpu.memory_space<vmem>>, vector<16x128xf32>
    tpu.vector_store %arg4[%c0_5, %c0_6], %5 {strides = array<i32>} : memref<16x128xf32, #tpu.memory_space<vmem>>, vector<16x128xf32>,
    return
  }
  func.func @transform_0(%arg0: i32) -> (i32, i32) {
    %c0_i32 = arith.constant 0 : i32
    %c0_i32_0 = arith.constant 0 : i32
    %c0_i32_1 = arith.constant 0 : i32
    return %c0_i32, %c0_i32_0 : i32, i32
  }
  func.func @transform_1(%arg0: i32) -> (i32, i32) {
    %c0_i32 = arith.constant 0 : i32
    %c0_i32_0 = arith.constant 0 : i32
    return %c0_i32, %arg0 : i32, i32
  }
  func.func @transform_2(%arg0: i32) -> (i32, i32) {
    %c0_i32 = arith.constant 0 : i32
    %c0_i32_0 = arith.constant 0 : i32
    return %c0_i32, %arg0 : i32, i32
  }
  func.func @transform_3(%arg0: i32) -> (i32, i32) {
    %c0_i32 = arith.constant 0 : i32
    %c0_i32_0 = arith.constant 0 : i32
    return %c0_i32, %arg0 : i32, i32
  }
}

module attributes {stable_mosaic.version = 11 : i64} {
  func.func @_decoder_stack_kernel(%arg0: i32, %arg1: memref<2x8x32xf32, #tpu.memory_space<vmem>>, %arg2: memref<2x8x32xf32, #tpu.memory_space<vmem>>, %arg3: memref<2x8x8xf32, #tpu.memory_space<vmem>>, %arg4: memref<1x32x96xf32, #tpu.memory_space<vmem>>, %arg5: memref<1x1x96xf32, #tpu.memory_space<vmem>>, %arg6: memref<1x32x32xf32, #tpu.memory_space<vmem>>, %arg7: memref<1x1x32xf32, #tpu.memory_space<vmem>>, %arg8: memref<1x1x32xf32, #tpu.memory_space<vmem>>, %arg9: memref<1x1x32xf32, #tpu.memory_space<vmem>>, %arg10: memref<1x32x32xf32, #tpu.memory_space<vmem>>, %arg11: memref<1x1x32xf32, #tpu.memory_space<vmem>>, %arg12: memref<1x32x64xf32, #tpu.memory_space<vmem>>, %arg13: memref<1x1x64xf32, #tpu.memory_space<vmem>>, %arg14: memref<1x32x32xf32, #tpu.memory_space<vmem>>, %arg15: memref<1x1x32xf32, #tpu.memory_space<vmem>>, %arg16: memref<1x1x32xf32, #tpu.memory_space<vmem>>, %arg17: memref<1x1x32xf32, #tpu.memory_space<vmem>>, %arg18: memref<1x32x64xf32, #tpu.memory_space<vmem>>, %arg19: memref<1x1x64xf32, #tpu.memory_space<vmem>>, %arg20: memref<1x64x32xf32, #tpu.memory_space<vmem>>, %arg21: memref<1x1x32xf32, #tpu.memory_space<vmem>>, %arg22: memref<2x8x32xf32, #tpu.memory_space<vmem>>, %arg23: memref<1x2x8x32xf32, #tpu.memory_space<vmem>>, %arg24: memref<16x32xf32, #tpu.memory_space<vmem>>, %arg25: memref<2x8x32xf32, #tpu.memory_space<vmem>>) attributes {dimension_semantics = [#tpu.dimension_semantics<arbitrary>], iteration_bounds = array<i64: 2>, scalar_prefetch = 0 : i64, scratch_operands = 2 : i64, tpu.core_type = #tpu.core_type<tc>, window_params = [{pipeline_mode = #tpu.pipeline_mode<synchronous>, transform_indices = @transform_0, window_bounds = array<i64: 2, 8, 32>}, {pipeline_mode = #tpu.pipeline_mode<synchronous>, transform_indices = @transform_1, window_bounds = array<i64: 2, 8, 32>}, {pipeline_mode = #tpu.pipeline_mode<synchronous>, transform_indices = @transform_2, window_bounds = array<i64: 2, 8, 8>}, {transform_indices = @transform_3, window_bounds = array<i64: 1, 32, 96>}, {transform_indices = @transform_4, window_bounds = array<i64: 1, 1, 96>}, {transform_indices = @transform_5, window_bounds = array<i64: 1, 32, 32>}, {transform_indices = @transform_6, window_bounds = array<i64: 1, 1, 32>}, {transform_indices = @transform_7, window_bounds = array<i64: 1, 1, 32>}, {transform_indices = @transform_8, window_bounds = array<i64: 1, 1, 32>}, {transform_indices = @transform_9, window_bounds = array<i64: 1, 32, 32>}, {transform_indices = @transform_10, window_bounds = array<i64: 1, 1, 32>}, {transform_indices = @transform_11, window_bounds = array<i64: 1, 32, 64>}, {transform_indices = @transform_12, window_bounds = array<i64: 1, 1, 64>}, {transform_indices = @transform_13, window_bounds = array<i64: 1, 32, 32>}, {transform_indices = @transform_14, window_bounds = array<i64: 1, 1, 32>}, {transform_indices = @transform_15, window_bounds = array<i64: 1, 1, 32>}, {transform_indices = @transform_16, window_bounds = array<i64: 1, 1, 32>}, {transform_indices = @transform_17, window_bounds = array<i64: 1, 32, 64>}, {transform_indices = @transform_18, window_bounds = array<i64: 1, 1, 64>}, {transform_indices = @transform_19, window_bounds = array<i64: 1, 64, 32>}, {transform_indices = @transform_20, window_bounds = array<i64: 1, 1, 32>}, {pipeline_mode = #tpu.pipeline_mode<synchronous>, transform_indices = @transform_21, window_bounds = array<i64: 2, 8, 32>}, {transform_indices = @transform_22, window_bounds = array<i64: 1, 2, 8, 32>}]} {
    %c0_i32 = arith.constant 0 : i32
    %0 = arith.cmpi eq, %arg0, %c0_i32 : i32
    %1 = arith.extui %0 : i1 to i32
    %c0_i32_0 = arith.constant 0 : i32
    %2 = arith.cmpi ne, %1, %c0_i32_0 : i32
    scf.if %2 {
      %c0_160 = arith.constant 0 : index
      %c0_161 = arith.constant 0 : index
      %c0_162 = arith.constant 0 : index
      %294 = vector.load %arg1[%c0_160, %c0_161, %c0_162] : memref<2x8x32xf32, #tpu.memory_space<vmem>>, vector<2x8x32xf32>
      %295 = vector.shape_cast %294 : vector<2x8x32xf32> to vector<16x32xf32>
      %c0_163 = arith.constant 0 : index
      %c0_164 = arith.constant 0 : index
      %296 = vector.load %arg24[%c0_163, %c0_164] : memref<16x32xf32, #tpu.memory_space<vmem>>, vector<16x32xf32>
      tpu.vector_store %arg24[%c0_163, %c0_164], %295 {strides = array<i32>} : memref<16x32xf32, #tpu.memory_space<vmem>>, vector<16x32xf32>,
    } else {
    }
    %c0 = arith.constant 0 : index
    %c0_1 = arith.constant 0 : index
    %3 = vector.load %arg24[%c0, %c0_1] : memref<16x32xf32, #tpu.memory_space<vmem>>, vector<16x32xf32>
    %4 = vector.shape_cast %3 : vector<16x32xf32> to vector<2x8x32xf32>
    %c0_2 = arith.constant 0 : index
    %c0_3 = arith.constant 0 : index
    %c0_4 = arith.constant 0 : index
    %c0_5 = arith.constant 0 : index
    %5 = vector.load %arg23[%c0_2, %c0_3, %c0_4, %c0_5] : memref<1x2x8x32xf32, #tpu.memory_space<vmem>>, vector<1x2x8x32xf32>
    %6 = vector.shape_cast %5 : vector<1x2x8x32xf32> to vector<2x8x32xf32>
    %7 = vector.shape_cast %4 : vector<2x8x32xf32> to vector<1x2x8x32xf32>
    tpu.vector_store %arg23[%c0_2, %c0_3, %c0_4, %c0_5], %7 {strides = array<i32>} : memref<1x2x8x32xf32, #tpu.memory_space<vmem>>, vector<1x2x8x32xf32>,
    %c0_6 = arith.constant 0 : index
    %c0_7 = arith.constant 0 : index
    %c0_8 = arith.constant 0 : index
    %8 = vector.load %arg2[%c0_6, %c0_7, %c0_8] : memref<2x8x32xf32, #tpu.memory_space<vmem>>, vector<2x8x32xf32>
    %9 = vector.shape_cast %8 : vector<2x8x32xf32> to vector<16x32xf32>
    %c0_9 = arith.constant 0 : index
    %c0_10 = arith.constant 0 : index
    %c0_11 = arith.constant 0 : index
    %10 = vector.load %arg3[%c0_9, %c0_10, %c0_11] : memref<2x8x8xf32, #tpu.memory_space<vmem>>, vector<2x8x8xf32>
    %c0_12 = arith.constant 0 : index
    %c0_13 = arith.constant 0 : index
    %c0_14 = arith.constant 0 : index
    %11 = vector.load %arg4[%c0_12, %c0_13, %c0_14] : memref<1x32x96xf32, #tpu.memory_space<vmem>>, vector<1x32x96xf32>
    %12 = vector.shape_cast %11 : vector<1x32x96xf32> to vector<32x96xf32>
    %cst = arith.constant dense<0.000000e+00> : vector<16x96xf32>
    %13 = tpu.matmul %3, %12, %cst {dimension_numbers = #tpu.dot_dimension_numbers<[1], [0], [0], [1], [0, 0, 1, 1], [], []>} : vector<16x32xf32>, vector<32x96xf32>, vector<16x96xf32> -> vector<16x96xf32>
    %c0_15 = arith.constant 0 : index
    %c0_16 = arith.constant 0 : index
    %c0_17 = arith.constant 0 : index
    %14 = vector.load %arg5[%c0_15, %c0_16, %c0_17] : memref<1x1x96xf32, #tpu.memory_space<vmem>>, vector<1x1x96xf32>
    %15 = vector.shape_cast %14 : vector<1x1x96xf32> to vector<1x96xf32>
    %16 = vector.broadcast %15 : vector<1x96xf32> to vector<16x96xf32>
    %17 = arith.addf %13, %16 : vector<16x96xf32>
    %18 = vector.extract_strided_slice %17 {offsets = [0, 0], sizes = [16, 32], strides = [1, 1]} : vector<16x96xf32> to vector<16x32xf32>
    %19 = vector.extract_strided_slice %17 {offsets = [0, 32], sizes = [16, 32], strides = [1, 1]} : vector<16x96xf32> to vector<16x32xf32>
    %20 = vector.extract_strided_slice %17 {offsets = [0, 64], sizes = [16, 32], strides = [1, 1]} : vector<16x96xf32> to vector<16x32xf32>
    %21 = vector.shape_cast %18 : vector<16x32xf32> to vector<2x8x32xf32>
    %cst_18 = arith.constant 0.353553385 : f32
    %22 = vector.broadcast %cst_18 : f32 to vector<2x8x32xf32>
    %23 = arith.mulf %21, %22 : vector<2x8x32xf32>
    %24 = vector.shape_cast %19 : vector<16x32xf32> to vector<2x8x32xf32>
    %25 = vector.shape_cast %20 : vector<16x32xf32> to vector<2x8x32xf32>
    %26 = vector.extract_strided_slice %23 {offsets = [0, 0, 0], sizes = [2, 8, 8], strides = [1, 1, 1]} : vector<2x8x32xf32> to vector<2x8x8xf32>
    %27 = vector.extract_strided_slice %24 {offsets = [0, 0, 0], sizes = [2, 8, 8], strides = [1, 1, 1]} : vector<2x8x32xf32> to vector<2x8x8xf32>
    "tpu.trace_start"() <{level = 10 : i32, message = "bqd,bkd->bqk"}> : () -> ()
    %cst_19 = arith.constant dense<0.000000e+00> : vector<2x8x8xf32>
    %28 = tpu.matmul %26, %27, %cst_19 {dimension_numbers = #tpu.dot_dimension_numbers<[2], [2], [1], [1], [0, 0, 0, 1, 1, 1], [0], [0]>} : vector<2x8x8xf32>, vector<2x8x8xf32>, vector<2x8x8xf32> -> vector<2x8x8xf32>
    "tpu.trace_stop"() : () -> ()
    %cst_20 = arith.constant dense<0xFF800000> : vector<2x8xf32>
    %29 = vector.multi_reduction <maximumf>, %28, %cst_20 [2] : vector<2x8x8xf32> to vector<2x8xf32>
    %30 = vector.shape_cast %29 : vector<2x8xf32> to vector<2x8x1xf32>
    %31 = vector.broadcast %30 : vector<2x8x1xf32> to vector<2x8x8xf32>
    %32 = arith.subf %28, %31 : vector<2x8x8xf32>
    %33 = math.exp %32 : vector<2x8x8xf32>
    %cst_21 = arith.constant dense<0.000000e+00> : vector<2x8xf32>
    %34 = vector.multi_reduction <add>, %33, %cst_21 [2] : vector<2x8x8xf32> to vector<2x8xf32>
    %35 = vector.shape_cast %34 : vector<2x8xf32> to vector<2x8x1xf32>
    %36 = tpu.reciprocal %35 {approx = true} : vector<2x8x1xf32> -> vector<2x8x1xf32>
    %37 = vector.broadcast %36 : vector<2x8x1xf32> to vector<2x8x8xf32>
    %38 = arith.mulf %33, %37 : vector<2x8x8xf32>
    %39 = vector.extract_strided_slice %25 {offsets = [0, 0, 0], sizes = [2, 8, 8], strides = [1, 1, 1]} : vector<2x8x32xf32> to vector<2x8x8xf32>
    "tpu.trace_start"() <{level = 10 : i32, message = "bqk,bkd->bqd"}> : () -> ()
    %cst_22 = arith.constant dense<0.000000e+00> : vector<2x8x8xf32>
    %40 = tpu.matmul %38, %39, %cst_22 {dimension_numbers = #tpu.dot_dimension_numbers<[2], [1], [1], [2], [0, 0, 0, 1, 1, 2], [0], [0]>} : vector<2x8x8xf32>, vector<2x8x8xf32>, vector<2x8x8xf32> -> vector<2x8x8xf32>
    "tpu.trace_stop"() : () -> ()
    %c0_23 = arith.constant 0 : index
    %c0_24 = arith.constant 0 : index
    %c0_25 = arith.constant 0 : index
    %41 = vector.load %arg25[%c0_23, %c0_24, %c0_25] : memref<2x8x32xf32, #tpu.memory_space<vmem>>, vector<2x8x8xf32>
    tpu.vector_store %arg25[%c0_23, %c0_24, %c0_25], %40 {strides = array<i32>} : memref<2x8x32xf32, #tpu.memory_space<vmem>>, vector<2x8x8xf32>,
    %42 = vector.extract_strided_slice %23 {offsets = [0, 0, 8], sizes = [2, 8, 8], strides = [1, 1, 1]} : vector<2x8x32xf32> to vector<2x8x8xf32>
    %43 = vector.extract_strided_slice %24 {offsets = [0, 0, 8], sizes = [2, 8, 8], strides = [1, 1, 1]} : vector<2x8x32xf32> to vector<2x8x8xf32>
    "tpu.trace_start"() <{level = 10 : i32, message = "bqd,bkd->bqk"}> : () -> ()
    %cst_26 = arith.constant dense<0.000000e+00> : vector<2x8x8xf32>
    %44 = tpu.matmul %42, %43, %cst_26 {dimension_numbers = #tpu.dot_dimension_numbers<[2], [2], [1], [1], [0, 0, 0, 1, 1, 1], [0], [0]>} : vector<2x8x8xf32>, vector<2x8x8xf32>, vector<2x8x8xf32> -> vector<2x8x8xf32>
    "tpu.trace_stop"() : () -> ()
    %cst_27 = arith.constant dense<0xFF800000> : vector<2x8xf32>
    %45 = vector.multi_reduction <maximumf>, %44, %cst_27 [2] : vector<2x8x8xf32> to vector<2x8xf32>
    %46 = vector.shape_cast %45 : vector<2x8xf32> to vector<2x8x1xf32>
    %47 = vector.broadcast %46 : vector<2x8x1xf32> to vector<2x8x8xf32>
    %48 = arith.subf %44, %47 : vector<2x8x8xf32>
    %49 = math.exp %48 : vector<2x8x8xf32>
    %cst_28 = arith.constant dense<0.000000e+00> : vector<2x8xf32>
    %50 = vector.multi_reduction <add>, %49, %cst_28 [2] : vector<2x8x8xf32> to vector<2x8xf32>
    %51 = vector.shape_cast %50 : vector<2x8xf32> to vector<2x8x1xf32>
    %52 = tpu.reciprocal %51 {approx = true} : vector<2x8x1xf32> -> vector<2x8x1xf32>
    %53 = vector.broadcast %52 : vector<2x8x1xf32> to vector<2x8x8xf32>
    %54 = arith.mulf %49, %53 : vector<2x8x8xf32>
    %55 = vector.extract_strided_slice %25 {offsets = [0, 0, 8], sizes = [2, 8, 8], strides = [1, 1, 1]} : vector<2x8x32xf32> to vector<2x8x8xf32>
    "tpu.trace_start"() <{level = 10 : i32, message = "bqk,bkd->bqd"}> : () -> ()
    %cst_29 = arith.constant dense<0.000000e+00> : vector<2x8x8xf32>
    %56 = tpu.matmul %54, %55, %cst_29 {dimension_numbers = #tpu.dot_dimension_numbers<[2], [1], [1], [2], [0, 0, 0, 1, 1, 2], [0], [0]>} : vector<2x8x8xf32>, vector<2x8x8xf32>, vector<2x8x8xf32> -> vector<2x8x8xf32>
    "tpu.trace_stop"() : () -> ()
    %c0_30 = arith.constant 0 : index
    %c0_31 = arith.constant 0 : index
    %c8 = arith.constant 8 : index
    %57 = vector.load %arg25[%c0_30, %c0_31, %c8] : memref<2x8x32xf32, #tpu.memory_space<vmem>>, vector<2x8x8xf32>
    tpu.vector_store %arg25[%c0_30, %c0_31, %c8], %56 {strides = array<i32>} : memref<2x8x32xf32, #tpu.memory_space<vmem>>, vector<2x8x8xf32>,
    %58 = vector.extract_strided_slice %23 {offsets = [0, 0, 16], sizes = [2, 8, 8], strides = [1, 1, 1]} : vector<2x8x32xf32> to vector<2x8x8xf32>
    %59 = vector.extract_strided_slice %24 {offsets = [0, 0, 16], sizes = [2, 8, 8], strides = [1, 1, 1]} : vector<2x8x32xf32> to vector<2x8x8xf32>
    "tpu.trace_start"() <{level = 10 : i32, message = "bqd,bkd->bqk"}> : () -> ()
    %cst_32 = arith.constant dense<0.000000e+00> : vector<2x8x8xf32>
    %60 = tpu.matmul %58, %59, %cst_32 {dimension_numbers = #tpu.dot_dimension_numbers<[2], [2], [1], [1], [0, 0, 0, 1, 1, 1], [0], [0]>} : vector<2x8x8xf32>, vector<2x8x8xf32>, vector<2x8x8xf32> -> vector<2x8x8xf32>
    "tpu.trace_stop"() : () -> ()
    %cst_33 = arith.constant dense<0xFF800000> : vector<2x8xf32>
    %61 = vector.multi_reduction <maximumf>, %60, %cst_33 [2] : vector<2x8x8xf32> to vector<2x8xf32>
    %62 = vector.shape_cast %61 : vector<2x8xf32> to vector<2x8x1xf32>
    %63 = vector.broadcast %62 : vector<2x8x1xf32> to vector<2x8x8xf32>
    %64 = arith.subf %60, %63 : vector<2x8x8xf32>
    %65 = math.exp %64 : vector<2x8x8xf32>
    %cst_34 = arith.constant dense<0.000000e+00> : vector<2x8xf32>
    %66 = vector.multi_reduction <add>, %65, %cst_34 [2] : vector<2x8x8xf32> to vector<2x8xf32>
    %67 = vector.shape_cast %66 : vector<2x8xf32> to vector<2x8x1xf32>
    %68 = tpu.reciprocal %67 {approx = true} : vector<2x8x1xf32> -> vector<2x8x1xf32>
    %69 = vector.broadcast %68 : vector<2x8x1xf32> to vector<2x8x8xf32>
    %70 = arith.mulf %65, %69 : vector<2x8x8xf32>
    %71 = vector.extract_strided_slice %25 {offsets = [0, 0, 16], sizes = [2, 8, 8], strides = [1, 1, 1]} : vector<2x8x32xf32> to vector<2x8x8xf32>
    "tpu.trace_start"() <{level = 10 : i32, message = "bqk,bkd->bqd"}> : () -> ()
    %cst_35 = arith.constant dense<0.000000e+00> : vector<2x8x8xf32>
    %72 = tpu.matmul %70, %71, %cst_35 {dimension_numbers = #tpu.dot_dimension_numbers<[2], [1], [1], [2], [0, 0, 0, 1, 1, 2], [0], [0]>} : vector<2x8x8xf32>, vector<2x8x8xf32>, vector<2x8x8xf32> -> vector<2x8x8xf32>
    "tpu.trace_stop"() : () -> ()
    %c0_36 = arith.constant 0 : index
    %c0_37 = arith.constant 0 : index
    %c16 = arith.constant 16 : index
    %73 = vector.load %arg25[%c0_36, %c0_37, %c16] : memref<2x8x32xf32, #tpu.memory_space<vmem>>, vector<2x8x8xf32>
    tpu.vector_store %arg25[%c0_36, %c0_37, %c16], %72 {strides = array<i32>} : memref<2x8x32xf32, #tpu.memory_space<vmem>>, vector<2x8x8xf32>,
    %74 = vector.extract_strided_slice %23 {offsets = [0, 0, 24], sizes = [2, 8, 8], strides = [1, 1, 1]} : vector<2x8x32xf32> to vector<2x8x8xf32>
    %75 = vector.extract_strided_slice %24 {offsets = [0, 0, 24], sizes = [2, 8, 8], strides = [1, 1, 1]} : vector<2x8x32xf32> to vector<2x8x8xf32>
    "tpu.trace_start"() <{level = 10 : i32, message = "bqd,bkd->bqk"}> : () -> ()
    %cst_38 = arith.constant dense<0.000000e+00> : vector<2x8x8xf32>
    %76 = tpu.matmul %74, %75, %cst_38 {dimension_numbers = #tpu.dot_dimension_numbers<[2], [2], [1], [1], [0, 0, 0, 1, 1, 1], [0], [0]>} : vector<2x8x8xf32>, vector<2x8x8xf32>, vector<2x8x8xf32> -> vector<2x8x8xf32>
    "tpu.trace_stop"() : () -> ()
    %cst_39 = arith.constant dense<0xFF800000> : vector<2x8xf32>
    %77 = vector.multi_reduction <maximumf>, %76, %cst_39 [2] : vector<2x8x8xf32> to vector<2x8xf32>
    %78 = vector.shape_cast %77 : vector<2x8xf32> to vector<2x8x1xf32>
    %79 = vector.broadcast %78 : vector<2x8x1xf32> to vector<2x8x8xf32>
    %80 = arith.subf %76, %79 : vector<2x8x8xf32>
    %81 = math.exp %80 : vector<2x8x8xf32>
    %cst_40 = arith.constant dense<0.000000e+00> : vector<2x8xf32>
    %82 = vector.multi_reduction <add>, %81, %cst_40 [2] : vector<2x8x8xf32> to vector<2x8xf32>
    %83 = vector.shape_cast %82 : vector<2x8xf32> to vector<2x8x1xf32>
    %84 = tpu.reciprocal %83 {approx = true} : vector<2x8x1xf32> -> vector<2x8x1xf32>
    %85 = vector.broadcast %84 : vector<2x8x1xf32> to vector<2x8x8xf32>
    %86 = arith.mulf %81, %85 : vector<2x8x8xf32>
    %87 = vector.extract_strided_slice %25 {offsets = [0, 0, 24], sizes = [2, 8, 8], strides = [1, 1, 1]} : vector<2x8x32xf32> to vector<2x8x8xf32>
    "tpu.trace_start"() <{level = 10 : i32, message = "bqk,bkd->bqd"}> : () -> ()
    %cst_41 = arith.constant dense<0.000000e+00> : vector<2x8x8xf32>
    %88 = tpu.matmul %86, %87, %cst_41 {dimension_numbers = #tpu.dot_dimension_numbers<[2], [1], [1], [2], [0, 0, 0, 1, 1, 2], [0], [0]>} : vector<2x8x8xf32>, vector<2x8x8xf32>, vector<2x8x8xf32> -> vector<2x8x8xf32>
    "tpu.trace_stop"() : () -> ()
    %c0_42 = arith.constant 0 : index
    %c0_43 = arith.constant 0 : index
    %c24 = arith.constant 24 : index
    %89 = vector.load %arg25[%c0_42, %c0_43, %c24] : memref<2x8x32xf32, #tpu.memory_space<vmem>>, vector<2x8x8xf32>
    tpu.vector_store %arg25[%c0_42, %c0_43, %c24], %88 {strides = array<i32>} : memref<2x8x32xf32, #tpu.memory_space<vmem>>, vector<2x8x8xf32>,
    %c0_44 = arith.constant 0 : index
    %c0_45 = arith.constant 0 : index
    %c0_46 = arith.constant 0 : index
    %90 = vector.load %arg25[%c0_44, %c0_45, %c0_46] : memref<2x8x32xf32, #tpu.memory_space<vmem>>, vector<2x8x32xf32>
    %91 = vector.shape_cast %90 : vector<2x8x32xf32> to vector<16x32xf32>
    %c0_47 = arith.constant 0 : index
    %c0_48 = arith.constant 0 : index
    %c0_49 = arith.constant 0 : index
    %92 = vector.load %arg6[%c0_47, %c0_48, %c0_49] : memref<1x32x32xf32, #tpu.memory_space<vmem>>, vector<1x32x32xf32>
    %93 = vector.shape_cast %92 : vector<1x32x32xf32> to vector<32x32xf32>
    %cst_50 = arith.constant dense<0.000000e+00> : vector<16x32xf32>
    %94 = tpu.matmul %91, %93, %cst_50 {dimension_numbers = #tpu.dot_dimension_numbers<[1], [0], [0], [1], [0, 0, 1, 1], [], []>} : vector<16x32xf32>, vector<32x32xf32>, vector<16x32xf32> -> vector<16x32xf32>
    %c0_51 = arith.constant 0 : index
    %c0_52 = arith.constant 0 : index
    %c0_53 = arith.constant 0 : index
    %95 = vector.load %arg7[%c0_51, %c0_52, %c0_53] : memref<1x1x32xf32, #tpu.memory_space<vmem>>, vector<1x1x32xf32>
    %96 = vector.shape_cast %95 : vector<1x1x32xf32> to vector<1x32xf32>
    %97 = vector.broadcast %96 : vector<1x32xf32> to vector<16x32xf32>
    %98 = arith.addf %94, %97 : vector<16x32xf32>
    %c0_54 = arith.constant 0 : index
    %c0_55 = arith.constant 0 : index
    %c0_56 = arith.constant 0 : index
    %99 = vector.load %arg8[%c0_54, %c0_55, %c0_56] : memref<1x1x32xf32, #tpu.memory_space<vmem>>, vector<1x1x32xf32>
    %100 = vector.shape_cast %99 : vector<1x1x32xf32> to vector<1x32xf32>
    %c0_57 = arith.constant 0 : index
    %c0_58 = arith.constant 0 : index
    %c0_59 = arith.constant 0 : index
    %101 = vector.load %arg9[%c0_57, %c0_58, %c0_59] : memref<1x1x32xf32, #tpu.memory_space<vmem>>, vector<1x1x32xf32>
    %102 = vector.shape_cast %101 : vector<1x1x32xf32> to vector<1x32xf32>
    %103 = arith.addf %3, %98 : vector<16x32xf32>
    %cst_60 = arith.constant dense<0.000000e+00> : vector<16xf32>
    %104 = vector.multi_reduction <add>, %103, %cst_60 [1] : vector<16x32xf32> to vector<16xf32>
    %105 = vector.shape_cast %104 : vector<16xf32> to vector<16x1xf32>
    %cst_61 = arith.constant 3.200000e+01 : f32
    %106 = vector.broadcast %cst_61 : f32 to vector<16x1xf32>
    %107 = arith.divf %105, %106 : vector<16x1xf32>
    %108 = vector.broadcast %107 : vector<16x1xf32> to vector<16x32xf32>
    %109 = arith.subf %103, %108 : vector<16x32xf32>
    %110 = arith.mulf %109, %109 : vector<16x32xf32>
    %cst_62 = arith.constant dense<0.000000e+00> : vector<16xf32>
    %111 = vector.multi_reduction <add>, %110, %cst_62 [1] : vector<16x32xf32> to vector<16xf32>
    %112 = vector.shape_cast %111 : vector<16xf32> to vector<16x1xf32>
    %cst_63 = arith.constant 3.100000e+01 : f32
    %113 = vector.broadcast %cst_63 : f32 to vector<16x1xf32>
    %114 = arith.divf %112, %113 : vector<16x1xf32>
    %115 = math.sqrt %114 : vector<16x1xf32>
    %cst_64 = arith.constant 9.99999971E-10 : f32
    %116 = vector.broadcast %cst_64 : f32 to vector<16x1xf32>
    %117 = arith.addf %115, %116 : vector<16x1xf32>
    %118 = arith.divf %107, %117 : vector<16x1xf32>
    %119 = vector.broadcast %118 : vector<16x1xf32> to vector<16x32xf32>
    %120 = arith.subf %103, %119 : vector<16x32xf32>
    %121 = vector.broadcast %100 : vector<1x32xf32> to vector<16x32xf32>
    %122 = arith.mulf %121, %120 : vector<16x32xf32>
    %123 = vector.broadcast %102 : vector<1x32xf32> to vector<16x32xf32>
    %124 = arith.addf %122, %123 : vector<16x32xf32>
    %c0_65 = arith.constant 0 : index
    %c0_66 = arith.constant 0 : index
    %c0_67 = arith.constant 0 : index
    %125 = vector.load %arg10[%c0_65, %c0_66, %c0_67] : memref<1x32x32xf32, #tpu.memory_space<vmem>>, vector<1x32x32xf32>
    %126 = vector.shape_cast %125 : vector<1x32x32xf32> to vector<32x32xf32>
    %cst_68 = arith.constant dense<0.000000e+00> : vector<16x32xf32>
    %127 = tpu.matmul %124, %126, %cst_68 {dimension_numbers = #tpu.dot_dimension_numbers<[1], [0], [0], [1], [0, 0, 1, 1], [], []>} : vector<16x32xf32>, vector<32x32xf32>, vector<16x32xf32> -> vector<16x32xf32>
    %c0_69 = arith.constant 0 : index
    %c0_70 = arith.constant 0 : index
    %c0_71 = arith.constant 0 : index
    %128 = vector.load %arg11[%c0_69, %c0_70, %c0_71] : memref<1x1x32xf32, #tpu.memory_space<vmem>>, vector<1x1x32xf32>
    %129 = vector.shape_cast %128 : vector<1x1x32xf32> to vector<1x32xf32>
    %130 = vector.broadcast %129 : vector<1x32xf32> to vector<16x32xf32>
    %131 = arith.addf %127, %130 : vector<16x32xf32>
    %c0_72 = arith.constant 0 : index
    %c0_73 = arith.constant 0 : index
    %c0_74 = arith.constant 0 : index
    %132 = vector.load %arg12[%c0_72, %c0_73, %c0_74] : memref<1x32x64xf32, #tpu.memory_space<vmem>>, vector<1x32x64xf32>
    %133 = vector.shape_cast %132 : vector<1x32x64xf32> to vector<32x64xf32>
    %cst_75 = arith.constant dense<0.000000e+00> : vector<16x64xf32>
    %134 = tpu.matmul %9, %133, %cst_75 {dimension_numbers = #tpu.dot_dimension_numbers<[1], [0], [0], [1], [0, 0, 1, 1], [], []>} : vector<16x32xf32>, vector<32x64xf32>, vector<16x64xf32> -> vector<16x64xf32>
    %c0_76 = arith.constant 0 : index
    %c0_77 = arith.constant 0 : index
    %c0_78 = arith.constant 0 : index
    %135 = vector.load %arg13[%c0_76, %c0_77, %c0_78] : memref<1x1x64xf32, #tpu.memory_space<vmem>>, vector<1x1x64xf32>
    %136 = vector.shape_cast %135 : vector<1x1x64xf32> to vector<1x64xf32>
    %137 = vector.broadcast %136 : vector<1x64xf32> to vector<16x64xf32>
    %138 = arith.addf %134, %137 : vector<16x64xf32>
    %139 = vector.extract_strided_slice %138 {offsets = [0, 0], sizes = [16, 32], strides = [1, 1]} : vector<16x64xf32> to vector<16x32xf32>
    %140 = vector.extract_strided_slice %138 {offsets = [0, 32], sizes = [16, 32], strides = [1, 1]} : vector<16x64xf32> to vector<16x32xf32>
    %141 = vector.shape_cast %131 : vector<16x32xf32> to vector<2x8x32xf32>
    %cst_79 = arith.constant 0.353553385 : f32
    %142 = vector.broadcast %cst_79 : f32 to vector<2x8x32xf32>
    %143 = arith.mulf %141, %142 : vector<2x8x32xf32>
    %144 = vector.shape_cast %139 : vector<16x32xf32> to vector<2x8x32xf32>
    %145 = vector.shape_cast %140 : vector<16x32xf32> to vector<2x8x32xf32>
    %146 = vector.extract_strided_slice %143 {offsets = [0, 0, 0], sizes = [2, 8, 8], strides = [1, 1, 1]} : vector<2x8x32xf32> to vector<2x8x8xf32>
    %147 = vector.extract_strided_slice %144 {offsets = [0, 0, 0], sizes = [2, 8, 8], strides = [1, 1, 1]} : vector<2x8x32xf32> to vector<2x8x8xf32>
    "tpu.trace_start"() <{level = 10 : i32, message = "bqd,bkd->bqk"}> : () -> ()
    %cst_80 = arith.constant dense<0.000000e+00> : vector<2x8x8xf32>
    %148 = tpu.matmul %146, %147, %cst_80 {dimension_numbers = #tpu.dot_dimension_numbers<[2], [2], [1], [1], [0, 0, 0, 1, 1, 1], [0], [0]>} : vector<2x8x8xf32>, vector<2x8x8xf32>, vector<2x8x8xf32> -> vector<2x8x8xf32>
    "tpu.trace_stop"() : () -> ()
    %149 = arith.addf %148, %10 : vector<2x8x8xf32>
    %cst_81 = arith.constant dense<0xFF800000> : vector<2x8xf32>
    %150 = vector.multi_reduction <maximumf>, %149, %cst_81 [2] : vector<2x8x8xf32> to vector<2x8xf32>
    %151 = vector.shape_cast %150 : vector<2x8xf32> to vector<2x8x1xf32>
    %152 = vector.broadcast %151 : vector<2x8x1xf32> to vector<2x8x8xf32>
    %153 = arith.subf %149, %152 : vector<2x8x8xf32>
    %154 = math.exp %153 : vector<2x8x8xf32>
    %cst_82 = arith.constant dense<0.000000e+00> : vector<2x8xf32>
    %155 = vector.multi_reduction <add>, %154, %cst_82 [2] : vector<2x8x8xf32> to vector<2x8xf32>
    %156 = vector.shape_cast %155 : vector<2x8xf32> to vector<2x8x1xf32>
    %157 = tpu.reciprocal %156 {approx = true} : vector<2x8x1xf32> -> vector<2x8x1xf32>
    %158 = vector.broadcast %157 : vector<2x8x1xf32> to vector<2x8x8xf32>
    %159 = arith.mulf %154, %158 : vector<2x8x8xf32>
    %160 = vector.extract_strided_slice %145 {offsets = [0, 0, 0], sizes = [2, 8, 8], strides = [1, 1, 1]} : vector<2x8x32xf32> to vector<2x8x8xf32>
    "tpu.trace_start"() <{level = 10 : i32, message = "bqk,bkd->bqd"}> : () -> ()
    %cst_83 = arith.constant dense<0.000000e+00> : vector<2x8x8xf32>
    %161 = tpu.matmul %159, %160, %cst_83 {dimension_numbers = #tpu.dot_dimension_numbers<[2], [1], [1], [2], [0, 0, 0, 1, 1, 2], [0], [0]>} : vector<2x8x8xf32>, vector<2x8x8xf32>, vector<2x8x8xf32> -> vector<2x8x8xf32>
    "tpu.trace_stop"() : () -> ()
    %c0_84 = arith.constant 0 : index
    %c0_85 = arith.constant 0 : index
    %c0_86 = arith.constant 0 : index
    %162 = vector.load %arg25[%c0_84, %c0_85, %c0_86] : memref<2x8x32xf32, #tpu.memory_space<vmem>>, vector<2x8x8xf32>
    tpu.vector_store %arg25[%c0_84, %c0_85, %c0_86], %161 {strides = array<i32>} : memref<2x8x32xf32, #tpu.memory_space<vmem>>, vector<2x8x8xf32>,
    %163 = vector.extract_strided_slice %143 {offsets = [0, 0, 8], sizes = [2, 8, 8], strides = [1, 1, 1]} : vector<2x8x32xf32> to vector<2x8x8xf32>
    %164 = vector.extract_strided_slice %144 {offsets = [0, 0, 8], sizes = [2, 8, 8], strides = [1, 1, 1]} : vector<2x8x32xf32> to vector<2x8x8xf32>
    "tpu.trace_start"() <{level = 10 : i32, message = "bqd,bkd->bqk"}> : () -> ()
    %cst_87 = arith.constant dense<0.000000e+00> : vector<2x8x8xf32>
    %165 = tpu.matmul %163, %164, %cst_87 {dimension_numbers = #tpu.dot_dimension_numbers<[2], [2], [1], [1], [0, 0, 0, 1, 1, 1], [0], [0]>} : vector<2x8x8xf32>, vector<2x8x8xf32>, vector<2x8x8xf32> -> vector<2x8x8xf32>
    "tpu.trace_stop"() : () -> ()
    %166 = arith.addf %165, %10 : vector<2x8x8xf32>
    %cst_88 = arith.constant dense<0xFF800000> : vector<2x8xf32>
    %167 = vector.multi_reduction <maximumf>, %166, %cst_88 [2] : vector<2x8x8xf32> to vector<2x8xf32>
    %168 = vector.shape_cast %167 : vector<2x8xf32> to vector<2x8x1xf32>
    %169 = vector.broadcast %168 : vector<2x8x1xf32> to vector<2x8x8xf32>
    %170 = arith.subf %166, %169 : vector<2x8x8xf32>
    %171 = math.exp %170 : vector<2x8x8xf32>
    %cst_89 = arith.constant dense<0.000000e+00> : vector<2x8xf32>
    %172 = vector.multi_reduction <add>, %171, %cst_89 [2] : vector<2x8x8xf32> to vector<2x8xf32>
    %173 = vector.shape_cast %172 : vector<2x8xf32> to vector<2x8x1xf32>
    %174 = tpu.reciprocal %173 {approx = true} : vector<2x8x1xf32> -> vector<2x8x1xf32>
    %175 = vector.broadcast %174 : vector<2x8x1xf32> to vector<2x8x8xf32>
    %176 = arith.mulf %171, %175 : vector<2x8x8xf32>
    %177 = vector.extract_strided_slice %145 {offsets = [0, 0, 8], sizes = [2, 8, 8], strides = [1, 1, 1]} : vector<2x8x32xf32> to vector<2x8x8xf32>
    "tpu.trace_start"() <{level = 10 : i32, message = "bqk,bkd->bqd"}> : () -> ()
    %cst_90 = arith.constant dense<0.000000e+00> : vector<2x8x8xf32>
    %178 = tpu.matmul %176, %177, %cst_90 {dimension_numbers = #tpu.dot_dimension_numbers<[2], [1], [1], [2], [0, 0, 0, 1, 1, 2], [0], [0]>} : vector<2x8x8xf32>, vector<2x8x8xf32>, vector<2x8x8xf32> -> vector<2x8x8xf32>
    "tpu.trace_stop"() : () -> ()
    %c0_91 = arith.constant 0 : index
    %c0_92 = arith.constant 0 : index
    %c8_93 = arith.constant 8 : index
    %179 = vector.load %arg25[%c0_91, %c0_92, %c8_93] : memref<2x8x32xf32, #tpu.memory_space<vmem>>, vector<2x8x8xf32>
    tpu.vector_store %arg25[%c0_91, %c0_92, %c8_93], %178 {strides = array<i32>} : memref<2x8x32xf32, #tpu.memory_space<vmem>>, vector<2x8x8xf32>,
    %180 = vector.extract_strided_slice %143 {offsets = [0, 0, 16], sizes = [2, 8, 8], strides = [1, 1, 1]} : vector<2x8x32xf32> to vector<2x8x8xf32>
    %181 = vector.extract_strided_slice %144 {offsets = [0, 0, 16], sizes = [2, 8, 8], strides = [1, 1, 1]} : vector<2x8x32xf32> to vector<2x8x8xf32>
    "tpu.trace_start"() <{level = 10 : i32, message = "bqd,bkd->bqk"}> : () -> ()
    %cst_94 = arith.constant dense<0.000000e+00> : vector<2x8x8xf32>
    %182 = tpu.matmul %180, %181, %cst_94 {dimension_numbers = #tpu.dot_dimension_numbers<[2], [2], [1], [1], [0, 0, 0, 1, 1, 1], [0], [0]>} : vector<2x8x8xf32>, vector<2x8x8xf32>, vector<2x8x8xf32> -> vector<2x8x8xf32>
    "tpu.trace_stop"() : () -> ()
    %183 = arith.addf %182, %10 : vector<2x8x8xf32>
    %cst_95 = arith.constant dense<0xFF800000> : vector<2x8xf32>
    %184 = vector.multi_reduction <maximumf>, %183, %cst_95 [2] : vector<2x8x8xf32> to vector<2x8xf32>
    %185 = vector.shape_cast %184 : vector<2x8xf32> to vector<2x8x1xf32>
    %186 = vector.broadcast %185 : vector<2x8x1xf32> to vector<2x8x8xf32>
    %187 = arith.subf %183, %186 : vector<2x8x8xf32>
    %188 = math.exp %187 : vector<2x8x8xf32>
    %cst_96 = arith.constant dense<0.000000e+00> : vector<2x8xf32>
    %189 = vector.multi_reduction <add>, %188, %cst_96 [2] : vector<2x8x8xf32> to vector<2x8xf32>
    %190 = vector.shape_cast %189 : vector<2x8xf32> to vector<2x8x1xf32>
    %191 = tpu.reciprocal %190 {approx = true} : vector<2x8x1xf32> -> vector<2x8x1xf32>
    %192 = vector.broadcast %191 : vector<2x8x1xf32> to vector<2x8x8xf32>
    %193 = arith.mulf %188, %192 : vector<2x8x8xf32>
    %194 = vector.extract_strided_slice %145 {offsets = [0, 0, 16], sizes = [2, 8, 8], strides = [1, 1, 1]} : vector<2x8x32xf32> to vector<2x8x8xf32>
    "tpu.trace_start"() <{level = 10 : i32, message = "bqk,bkd->bqd"}> : () -> ()
    %cst_97 = arith.constant dense<0.000000e+00> : vector<2x8x8xf32>
    %195 = tpu.matmul %193, %194, %cst_97 {dimension_numbers = #tpu.dot_dimension_numbers<[2], [1], [1], [2], [0, 0, 0, 1, 1, 2], [0], [0]>} : vector<2x8x8xf32>, vector<2x8x8xf32>, vector<2x8x8xf32> -> vector<2x8x8xf32>
    "tpu.trace_stop"() : () -> ()
    %c0_98 = arith.constant 0 : index
    %c0_99 = arith.constant 0 : index
    %c16_100 = arith.constant 16 : index
    %196 = vector.load %arg25[%c0_98, %c0_99, %c16_100] : memref<2x8x32xf32, #tpu.memory_space<vmem>>, vector<2x8x8xf32>
    tpu.vector_store %arg25[%c0_98, %c0_99, %c16_100], %195 {strides = array<i32>} : memref<2x8x32xf32, #tpu.memory_space<vmem>>, vector<2x8x8xf32>,
    %197 = vector.extract_strided_slice %143 {offsets = [0, 0, 24], sizes = [2, 8, 8], strides = [1, 1, 1]} : vector<2x8x32xf32> to vector<2x8x8xf32>
    %198 = vector.extract_strided_slice %144 {offsets = [0, 0, 24], sizes = [2, 8, 8], strides = [1, 1, 1]} : vector<2x8x32xf32> to vector<2x8x8xf32>
    "tpu.trace_start"() <{level = 10 : i32, message = "bqd,bkd->bqk"}> : () -> ()
    %cst_101 = arith.constant dense<0.000000e+00> : vector<2x8x8xf32>
    %199 = tpu.matmul %197, %198, %cst_101 {dimension_numbers = #tpu.dot_dimension_numbers<[2], [2], [1], [1], [0, 0, 0, 1, 1, 1], [0], [0]>} : vector<2x8x8xf32>, vector<2x8x8xf32>, vector<2x8x8xf32> -> vector<2x8x8xf32>
    "tpu.trace_stop"() : () -> ()
    %200 = arith.addf %199, %10 : vector<2x8x8xf32>
    %cst_102 = arith.constant dense<0xFF800000> : vector<2x8xf32>
    %201 = vector.multi_reduction <maximumf>, %200, %cst_102 [2] : vector<2x8x8xf32> to vector<2x8xf32>
    %202 = vector.shape_cast %201 : vector<2x8xf32> to vector<2x8x1xf32>
    %203 = vector.broadcast %202 : vector<2x8x1xf32> to vector<2x8x8xf32>
    %204 = arith.subf %200, %203 : vector<2x8x8xf32>
    %205 = math.exp %204 : vector<2x8x8xf32>
    %cst_103 = arith.constant dense<0.000000e+00> : vector<2x8xf32>
    %206 = vector.multi_reduction <add>, %205, %cst_103 [2] : vector<2x8x8xf32> to vector<2x8xf32>
    %207 = vector.shape_cast %206 : vector<2x8xf32> to vector<2x8x1xf32>
    %208 = tpu.reciprocal %207 {approx = true} : vector<2x8x1xf32> -> vector<2x8x1xf32>
    %209 = vector.broadcast %208 : vector<2x8x1xf32> to vector<2x8x8xf32>
    %210 = arith.mulf %205, %209 : vector<2x8x8xf32>
    %211 = vector.extract_strided_slice %145 {offsets = [0, 0, 24], sizes = [2, 8, 8], strides = [1, 1, 1]} : vector<2x8x32xf32> to vector<2x8x8xf32>
    "tpu.trace_start"() <{level = 10 : i32, message = "bqk,bkd->bqd"}> : () -> ()
    %cst_104 = arith.constant dense<0.000000e+00> : vector<2x8x8xf32>
    %212 = tpu.matmul %210, %211, %cst_104 {dimension_numbers = #tpu.dot_dimension_numbers<[2], [1], [1], [2], [0, 0, 0, 1, 1, 2], [0], [0]>} : vector<2x8x8xf32>, vector<2x8x8xf32>, vector<2x8x8xf32> -> vector<2x8x8xf32>
    "tpu.trace_stop"() : () -> ()
    %c0_105 = arith.constant 0 : index
    %c0_106 = arith.constant 0 : index
    %c24_107 = arith.constant 24 : index
    %213 = vector.load %arg25[%c0_105, %c0_106, %c24_107] : memref<2x8x32xf32, #tpu.memory_space<vmem>>, vector<2x8x8xf32>
    tpu.vector_store %arg25[%c0_105, %c0_106, %c24_107], %212 {strides = array<i32>} : memref<2x8x32xf32, #tpu.memory_space<vmem>>, vector<2x8x8xf32>,
    %c0_108 = arith.constant 0 : index
    %c0_109 = arith.constant 0 : index
    %c0_110 = arith.constant 0 : index
    %214 = vector.load %arg25[%c0_108, %c0_109, %c0_110] : memref<2x8x32xf32, #tpu.memory_space<vmem>>, vector<2x8x32xf32>
    %215 = vector.shape_cast %214 : vector<2x8x32xf32> to vector<16x32xf32>
    %c0_111 = arith.constant 0 : index
    %c0_112 = arith.constant 0 : index
    %c0_113 = arith.constant 0 : index
    %216 = vector.load %arg14[%c0_111, %c0_112, %c0_113] : memref<1x32x32xf32, #tpu.memory_space<vmem>>, vector<1x32x32xf32>
    %217 = vector.shape_cast %216 : vector<1x32x32xf32> to vector<32x32xf32>
    %cst_114 = arith.constant dense<0.000000e+00> : vector<16x32xf32>
    %218 = tpu.matmul %215, %217, %cst_114 {dimension_numbers = #tpu.dot_dimension_numbers<[1], [0], [0], [1], [0, 0, 1, 1], [], []>} : vector<16x32xf32>, vector<32x32xf32>, vector<16x32xf32> -> vector<16x32xf32>
    %c0_115 = arith.constant 0 : index
    %c0_116 = arith.constant 0 : index
    %c0_117 = arith.constant 0 : index
    %219 = vector.load %arg15[%c0_115, %c0_116, %c0_117] : memref<1x1x32xf32, #tpu.memory_space<vmem>>, vector<1x1x32xf32>
    %220 = vector.shape_cast %219 : vector<1x1x32xf32> to vector<1x32xf32>
    %221 = vector.broadcast %220 : vector<1x32xf32> to vector<16x32xf32>
    %222 = arith.addf %218, %221 : vector<16x32xf32>
    %c0_118 = arith.constant 0 : index
    %c0_119 = arith.constant 0 : index
    %c0_120 = arith.constant 0 : index
    %223 = vector.load %arg16[%c0_118, %c0_119, %c0_120] : memref<1x1x32xf32, #tpu.memory_space<vmem>>, vector<1x1x32xf32>
    %224 = vector.shape_cast %223 : vector<1x1x32xf32> to vector<1x32xf32>
    %c0_121 = arith.constant 0 : index
    %c0_122 = arith.constant 0 : index
    %c0_123 = arith.constant 0 : index
    %225 = vector.load %arg17[%c0_121, %c0_122, %c0_123] : memref<1x1x32xf32, #tpu.memory_space<vmem>>, vector<1x1x32xf32>
    %226 = vector.shape_cast %225 : vector<1x1x32xf32> to vector<1x32xf32>
    %227 = arith.addf %124, %222 : vector<16x32xf32>
    %cst_124 = arith.constant dense<0.000000e+00> : vector<16xf32>
    %228 = vector.multi_reduction <add>, %227, %cst_124 [1] : vector<16x32xf32> to vector<16xf32>
    %229 = vector.shape_cast %228 : vector<16xf32> to vector<16x1xf32>
    %cst_125 = arith.constant 3.200000e+01 : f32
    %230 = vector.broadcast %cst_125 : f32 to vector<16x1xf32>
    %231 = arith.divf %229, %230 : vector<16x1xf32>
    %232 = vector.broadcast %231 : vector<16x1xf32> to vector<16x32xf32>
    %233 = arith.subf %227, %232 : vector<16x32xf32>
    %234 = arith.mulf %233, %233 : vector<16x32xf32>
    %cst_126 = arith.constant dense<0.000000e+00> : vector<16xf32>
    %235 = vector.multi_reduction <add>, %234, %cst_126 [1] : vector<16x32xf32> to vector<16xf32>
    %236 = vector.shape_cast %235 : vector<16xf32> to vector<16x1xf32>
    %cst_127 = arith.constant 3.100000e+01 : f32
    %237 = vector.broadcast %cst_127 : f32 to vector<16x1xf32>
    %238 = arith.divf %236, %237 : vector<16x1xf32>
    %239 = math.sqrt %238 : vector<16x1xf32>
    %cst_128 = arith.constant 9.99999971E-10 : f32
    %240 = vector.broadcast %cst_128 : f32 to vector<16x1xf32>
    %241 = arith.addf %239, %240 : vector<16x1xf32>
    %242 = arith.divf %231, %241 : vector<16x1xf32>
    %243 = vector.broadcast %242 : vector<16x1xf32> to vector<16x32xf32>
    %244 = arith.subf %227, %243 : vector<16x32xf32>
    %245 = vector.broadcast %224 : vector<1x32xf32> to vector<16x32xf32>
    %246 = arith.mulf %245, %244 : vector<16x32xf32>
    %247 = vector.broadcast %226 : vector<1x32xf32> to vector<16x32xf32>
    %248 = arith.addf %246, %247 : vector<16x32xf32>
    %c0_129 = arith.constant 0 : index
    %c0_130 = arith.constant 0 : index
    %c0_131 = arith.constant 0 : index
    %249 = vector.load %arg18[%c0_129, %c0_130, %c0_131] : memref<1x32x64xf32, #tpu.memory_space<vmem>>, vector<1x32x64xf32>
    %250 = vector.shape_cast %249 : vector<1x32x64xf32> to vector<32x64xf32>
    %cst_132 = arith.constant dense<0.000000e+00> : vector<16x64xf32>
    %251 = tpu.matmul %248, %250, %cst_132 {dimension_numbers = #tpu.dot_dimension_numbers<[1], [0], [0], [1], [0, 0, 1, 1], [], []>} : vector<16x32xf32>, vector<32x64xf32>, vector<16x64xf32> -> vector<16x64xf32>
    %c0_133 = arith.constant 0 : index
    %c0_134 = arith.constant 0 : index
    %c0_135 = arith.constant 0 : index
    %252 = vector.load %arg19[%c0_133, %c0_134, %c0_135] : memref<1x1x64xf32, #tpu.memory_space<vmem>>, vector<1x1x64xf32>
    %253 = vector.shape_cast %252 : vector<1x1x64xf32> to vector<1x64xf32>
    %254 = vector.broadcast %253 : vector<1x64xf32> to vector<16x64xf32>
    %255 = arith.addf %251, %254 : vector<16x64xf32>
    %cst_136 = arith.constant 0.000000e+00 : f32
    %256 = vector.broadcast %cst_136 : f32 to vector<16x64xf32>
    %257 = arith.maximumf %255, %256 : vector<16x64xf32>
    %c0_137 = arith.constant 0 : index
    %c0_138 = arith.constant 0 : index
    %c0_139 = arith.constant 0 : index
    %258 = vector.load %arg20[%c0_137, %c0_138, %c0_139] : memref<1x64x32xf32, #tpu.memory_space<vmem>>, vector<1x64x32xf32>
    %259 = vector.shape_cast %258 : vector<1x64x32xf32> to vector<64x32xf32>
    %cst_140 = arith.constant dense<0.000000e+00> : vector<16x32xf32>
    %260 = tpu.matmul %257, %259, %cst_140 {dimension_numbers = #tpu.dot_dimension_numbers<[1], [0], [0], [1], [0, 0, 1, 1], [], []>} : vector<16x64xf32>, vector<64x32xf32>, vector<16x32xf32> -> vector<16x32xf32>
    %c0_141 = arith.constant 0 : index
    %c0_142 = arith.constant 0 : index
    %c0_143 = arith.constant 0 : index
    %261 = vector.load %arg21[%c0_141, %c0_142, %c0_143] : memref<1x1x32xf32, #tpu.memory_space<vmem>>, vector<1x1x32xf32>
    %262 = vector.shape_cast %261 : vector<1x1x32xf32> to vector<1x32xf32>
    %263 = vector.broadcast %262 : vector<1x32xf32> to vector<16x32xf32>
    %264 = arith.addf %260, %263 : vector<16x32xf32>
    %c0_144 = arith.constant 0 : index
    %c0_145 = arith.constant 0 : index
    %c0_146 = arith.constant 0 : index
    %265 = vector.load %arg16[%c0_144, %c0_145, %c0_146] : memref<1x1x32xf32, #tpu.memory_space<vmem>>, vector<1x1x32xf32>
    %266 = vector.shape_cast %265 : vector<1x1x32xf32> to vector<1x32xf32>
    %c0_147 = arith.constant 0 : index
    %c0_148 = arith.constant 0 : index
    %c0_149 = arith.constant 0 : index
    %267 = vector.load %arg17[%c0_147, %c0_148, %c0_149] : memref<1x1x32xf32, #tpu.memory_space<vmem>>, vector<1x1x32xf32>
    %268 = vector.shape_cast %267 : vector<1x1x32xf32> to vector<1x32xf32>
    %269 = arith.addf %248, %264 : vector<16x32xf32>
    %cst_150 = arith.constant dense<0.000000e+00> : vector<16xf32>
    %270 = vector.multi_reduction <add>, %269, %cst_150 [1] : vector<16x32xf32> to vector<16xf32>
    %271 = vector.shape_cast %270 : vector<16xf32> to vector<16x1xf32>
    %cst_151 = arith.constant 3.200000e+01 : f32
    %272 = vector.broadcast %cst_151 : f32 to vector<16x1xf32>
    %273 = arith.divf %271, %272 : vector<16x1xf32>
    %274 = vector.broadcast %273 : vector<16x1xf32> to vector<16x32xf32>
    %275 = arith.subf %269, %274 : vector<16x32xf32>
    %276 = arith.mulf %275, %275 : vector<16x32xf32>
    %cst_152 = arith.constant dense<0.000000e+00> : vector<16xf32>
    %277 = vector.multi_reduction <add>, %276, %cst_152 [1] : vector<16x32xf32> to vector<16xf32>
    %278 = vector.shape_cast %277 : vector<16xf32> to vector<16x1xf32>
    %cst_153 = arith.constant 3.100000e+01 : f32
    %279 = vector.broadcast %cst_153 : f32 to vector<16x1xf32>
    %280 = arith.divf %278, %279 : vector<16x1xf32>
    %281 = math.sqrt %280 : vector<16x1xf32>
    %cst_154 = arith.constant 9.99999971E-10 : f32
    %282 = vector.broadcast %cst_154 : f32 to vector<16x1xf32>
    %283 = arith.addf %281, %282 : vector<16x1xf32>
    %284 = arith.divf %273, %283 : vector<16x1xf32>
    %285 = vector.broadcast %284 : vector<16x1xf32> to vector<16x32xf32>
    %286 = arith.subf %269, %285 : vector<16x32xf32>
    %287 = vector.broadcast %266 : vector<1x32xf32> to vector<16x32xf32>
    %288 = arith.mulf %287, %286 : vector<16x32xf32>
    %289 = vector.broadcast %268 : vector<1x32xf32> to vector<16x32xf32>
    %290 = arith.addf %288, %289 : vector<16x32xf32>
    %c0_155 = arith.constant 0 : index
    %c0_156 = arith.constant 0 : index
    %291 = vector.load %arg24[%c0_155, %c0_156] : memref<16x32xf32, #tpu.memory_space<vmem>>, vector<16x32xf32>
    tpu.vector_store %arg24[%c0_155, %c0_156], %290 {strides = array<i32>} : memref<16x32xf32, #tpu.memory_space<vmem>>, vector<16x32xf32>,
    %292 = vector.shape_cast %290 : vector<16x32xf32> to vector<2x8x32xf32>
    %c0_157 = arith.constant 0 : index
    %c0_158 = arith.constant 0 : index
    %c0_159 = arith.constant 0 : index
    %293 = vector.load %arg22[%c0_157, %c0_158, %c0_159] : memref<2x8x32xf32, #tpu.memory_space<vmem>>, vector<2x8x32xf32>
    tpu.vector_store %arg22[%c0_157, %c0_158, %c0_159], %292 {strides = array<i32>} : memref<2x8x32xf32, #tpu.memory_space<vmem>>, vector<2x8x32xf32>,
    return
  }
  func.func @transform_0(%arg0: i32) -> (i32, i32, i32) {
    %c0_i32 = arith.constant 0 : i32
    %c0_i32_0 = arith.constant 0 : i32
    %c0_i32_1 = arith.constant 0 : i32
    %c0_i32_2 = arith.constant 0 : i32
    return %c0_i32, %c0_i32_0, %c0_i32_1 : i32, i32, i32
  }
  func.func @transform_1(%arg0: i32) -> (i32, i32, i32) {
    %c0_i32 = arith.constant 0 : i32
    %c0_i32_0 = arith.constant 0 : i32
    %c0_i32_1 = arith.constant 0 : i32
    %c0_i32_2 = arith.constant 0 : i32
    return %c0_i32, %c0_i32_0, %c0_i32_1 : i32, i32, i32
  }
  func.func @transform_2(%arg0: i32) -> (i32, i32, i32) {
    %c0_i32 = arith.constant 0 : i32
    %c0_i32_0 = arith.constant 0 : i32
    %c0_i32_1 = arith.constant 0 : i32
    %c0_i32_2 = arith.constant 0 : i32
    return %c0_i32, %c0_i32_0, %c0_i32_1 : i32, i32, i32
  }
  func.func @transform_3(%arg0: i32) -> (i32, i32, i32) {
    %c0_i32 = arith.constant 0 : i32
    %c0_i32_0 = arith.constant 0 : i32
    %c0_i32_1 = arith.constant 0 : i32
    return %arg0, %c0_i32, %c0_i32_0 : i32, i32, i32
  }
  func.func @transform_4(%arg0: i32) -> (i32, i32, i32) {
    %c0_i32 = arith.constant 0 : i32
    %c0_i32_0 = arith.constant 0 : i32
    %c0_i32_1 = arith.constant 0 : i32
    return %arg0, %c0_i32, %c0_i32_0 : i32, i32, i32
  }
  func.func @transform_5(%arg0: i32) -> (i32, i32, i32) {
    %c0_i32 = arith.constant 0 : i32
    %c0_i32_0 = arith.constant 0 : i32
    %c0_i32_1 = arith.constant 0 : i32
    return %arg0, %c0_i32, %c0_i32_0 : i32, i32, i32
  }
  func.func @transform_6(%arg0: i32) -> (i32, i32, i32) {
    %c0_i32 = arith.constant 0 : i32
    %c0_i32_0 = arith.constant 0 : i32
    %c0_i32_1 = arith.constant 0 : i32
    return %arg0, %c0_i32, %c0_i32_0 : i32, i32, i32
  }
  func.func @transform_7(%arg0: i32) -> (i32, i32, i32) {
    %c0_i32 = arith.constant 0 : i32
    %c0_i32_0 = arith.constant 0 : i32
    %c0_i32_1 = arith.constant 0 : i32
    return %arg0, %c0_i32, %c0_i32_0 : i32, i32, i32
  }
  func.func @transform_8(%arg0: i32) -> (i32, i32, i32) {
    %c0_i32 = arith.constant 0 : i32
    %c0_i32_0 = arith.constant 0 : i32
    %c0_i32_1 = arith.constant 0 : i32
    return %arg0, %c0_i32, %c0_i32_0 : i32, i32, i32
  }
  func.func @transform_9(%arg0: i32) -> (i32, i32, i32) {
    %c0_i32 = arith.constant 0 : i32
    %c0_i32_0 = arith.constant 0 : i32
    %c0_i32_1 = arith.constant 0 : i32
    return %arg0, %c0_i32, %c0_i32_0 : i32, i32, i32
  }
  func.func @transform_10(%arg0: i32) -> (i32, i32, i32) {
    %c0_i32 = arith.constant 0 : i32
    %c0_i32_0 = arith.constant 0 : i32
    %c0_i32_1 = arith.constant 0 : i32
    return %arg0, %c0_i32, %c0_i32_0 : i32, i32, i32
  }
  func.func @transform_11(%arg0: i32) -> (i32, i32, i32) {
    %c0_i32 = arith.constant 0 : i32
    %c0_i32_0 = arith.constant 0 : i32
    %c0_i32_1 = arith.constant 0 : i32
    return %arg0, %c0_i32, %c0_i32_0 : i32, i32, i32
  }
  func.func @transform_12(%arg0: i32) -> (i32, i32, i32) {
    %c0_i32 = arith.constant 0 : i32
    %c0_i32_0 = arith.constant 0 : i32
    %c0_i32_1 = arith.constant 0 : i32
    return %arg0, %c0_i32, %c0_i32_0 : i32, i32, i32
  }
  func.func @transform_13(%arg0: i32) -> (i32, i32, i32) {
    %c0_i32 = arith.constant 0 : i32
    %c0_i32_0 = arith.constant 0 : i32
    %c0_i32_1 = arith.constant 0 : i32
    return %arg0, %c0_i32, %c0_i32_0 : i32, i32, i32
  }
  func.func @transform_14(%arg0: i32) -> (i32, i32, i32) {
    %c0_i32 = arith.constant 0 : i32
    %c0_i32_0 = arith.constant 0 : i32
    %c0_i32_1 = arith.constant 0 : i32
    return %arg0, %c0_i32, %c0_i32_0 : i32, i32, i32
  }
  func.func @transform_15(%arg0: i32) -> (i32, i32, i32) {
    %c0_i32 = arith.constant 0 : i32
    %c0_i32_0 = arith.constant 0 : i32
    %c0_i32_1 = arith.constant 0 : i32
    return %arg0, %c0_i32, %c0_i32_0 : i32, i32, i32
  }
  func.func @transform_16(%arg0: i32) -> (i32, i32, i32) {
    %c0_i32 = arith.constant 0 : i32
    %c0_i32_0 = arith.constant 0 : i32
    %c0_i32_1 = arith.constant 0 : i32
    return %arg0, %c0_i32, %c0_i32_0 : i32, i32, i32
  }
  func.func @transform_17(%arg0: i32) -> (i32, i32, i32) {
    %c0_i32 = arith.constant 0 : i32
    %c0_i32_0 = arith.constant 0 : i32
    %c0_i32_1 = arith.constant 0 : i32
    return %arg0, %c0_i32, %c0_i32_0 : i32, i32, i32
  }
  func.func @transform_18(%arg0: i32) -> (i32, i32, i32) {
    %c0_i32 = arith.constant 0 : i32
    %c0_i32_0 = arith.constant 0 : i32
    %c0_i32_1 = arith.constant 0 : i32
    return %arg0, %c0_i32, %c0_i32_0 : i32, i32, i32
  }
  func.func @transform_19(%arg0: i32) -> (i32, i32, i32) {
    %c0_i32 = arith.constant 0 : i32
    %c0_i32_0 = arith.constant 0 : i32
    %c0_i32_1 = arith.constant 0 : i32
    return %arg0, %c0_i32, %c0_i32_0 : i32, i32, i32
  }
  func.func @transform_20(%arg0: i32) -> (i32, i32, i32) {
    %c0_i32 = arith.constant 0 : i32
    %c0_i32_0 = arith.constant 0 : i32
    %c0_i32_1 = arith.constant 0 : i32
    return %arg0, %c0_i32, %c0_i32_0 : i32, i32, i32
  }
  func.func @transform_21(%arg0: i32) -> (i32, i32, i32) {
    %c0_i32 = arith.constant 0 : i32
    %c0_i32_0 = arith.constant 0 : i32
    %c0_i32_1 = arith.constant 0 : i32
    %c0_i32_2 = arith.constant 0 : i32
    return %c0_i32, %c0_i32_0, %c0_i32_1 : i32, i32, i32
  }
  func.func @transform_22(%arg0: i32) -> (i32, i32, i32, i32) {
    %c0_i32 = arith.constant 0 : i32
    %c0_i32_0 = arith.constant 0 : i32
    %c0_i32_1 = arith.constant 0 : i32
    %c0_i32_2 = arith.constant 0 : i32
    return %arg0, %c0_i32, %c0_i32_0, %c0_i32_1 : i32, i32, i32, i32
  }
}

</mosaic_0001>

<bundles_post_ra>
// kernel: decoder_forward.3
= control target key start
LH: loop header
LB: loop body
LE: loop exit
PB: predicated region body
PF: predicated region fallthrough
CT: control target
= control target key end

     0   :  { %vm27_vm0 = vcmask 261120   ;;  %s190_s1 = inlined_call_operand.vmem [shape: f32[32,128], index: 1, kind: input, shape index: {}]   ;;  %s191_s0 = inlined_call_operand.vmem [shape: f32[16,32], index: 0, kind: input, shape index: {}]   ;;  %s192_s2 = inlined_call_operand.vmem [shape: f32[1,128], index: 2, kind: input, shape index: {}]   ;;  %s193_s3 = inlined_call_operand.vmem [shape: f32[16,128], index: 3, kind: output, shape index: {}]  }
   0x1   :  { %v16_v0 = vld [vmem:[%s190_s1] sm:$0xff]  ;;  %v17_v1 = vld [vmem:[%s190_s1 + $0x8] sm:$0xff]  ;;  %v18_v2 = vld [vmem:[%s190_s1 + $0x10] sm:$0xff] }
   0x2   :  { %v135_v3 = vpack.c.bf16 %v17_v1, %v16_v0  ;;  %v19_v4 = vld [vmem:[%s190_s1 + $0x18] sm:$0xff]  ;;  %v14_v5 = vld [vmem:[%s191_s0] sm:$0xff]  ;;  %v15_v7 = vld [vmem:[%s191_s0 + $0x8] sm:$0xff] }
   0x3   :  { %v139_v6 = vpack.c.bf16 %v19_v4, %v18_v2  ;;  %132 = vmatprep.mubr.msk.f32.mxu0 %vm27_vm0, %v14_v5  ;;  %v115_v8 = vld [vmem:[%s192_s2] ss:$0 sm:$0xff] }
   0x4   :  { %136 = vmatprep.subr.bf16.mxu0 %v135_v3 }
   0x5   :  { %138 = vmatpush3.bf16.msra.mxu0 %v135_v3 }
   0x6   :  { %140 = vmatprep.subr.bf16.mxu0 %v139_v6 }
   0x9   :  { %142 = vmatpush3.bf16.msra.mxu0 %v139_v6 }
   0xc   :  { %133 = vmatmul.mubr.msk.f32.vlgmr.msra.gmra.mrb[0].mxu0 %vm27_vm0, %v15_v7 }
  0xdf   :  { %v134_v9 = vpop.f32.mrb[0].mxu0 }
  0xe0   :  { %v106_v10 = vadd.f32 %v134_v9, %v115_v8  ;;  %v100_v11 = vpop.f32.mrb[1].mxu0 }
  0xe1   :  { %v101_v12 = vadd.f32 %v115_v8, %v100_v11 }
  0xe2   :  { %110 = vst [vmem:[%s193_s3 + $0x8] sm:$0xff] %v106_v10 }
  0xe3   :  { %109 = vst [vmem:[%s193_s3] sm:$0xff] %v101_v12 }

// kernel: decoder_forward.2
= control target key start
LH: loop header
LB: loop body
LE: loop exit
PB: predicated region body
PF: predicated region fallthrough
CT: control target
= control target key end

     0   :  { %s6154_s0 = inlined_call_operand.vmem [shape: f32[2,8,32], index: 0, kind: input, shape index: {}]   ;;  %s6155_s1 = inlined_call_operand.vmem [shape: f32[2,8,32], index: 1, kind: input, shape index: {}]   ;;  %s6156_s2 = inlined_call_operand.vmem [shape: f32[2,8,8], index: 2, kind: input, shape index: {}]   ;;  %s6157_s3 = inlined_call_operand.vmem [shape: f32[2,32,96], index: 3, kind: input, shape index: {}]   ;;  %s6158_s4 = inlined_call_operand.vmem [shape: f32[2,1,96], index: 4, kind: input, shape index: {}]   ;;  %s6159_s5 = inlined_call_operand.vmem [shape: f32[2,32,32], index: 5, kind: input, shape index: {}]   ;;  %s6160_s6 = inlined_call_operand.vmem [shape: f32[2,1,32], index: 6, kind: input, shape index: {}]   ;;  %s6161_s7 = inlined_call_operand.vmem [shape: f32[2,1,32], index: 7, kind: input, shape index: {}]   ;;  %s6162_s8 = inlined_call_operand.vmem [shape: f32[2,1,32], index: 8, kind: input, shape index: {}]   ;;  %s6163_s9 = inlined_call_operand.vmem [shape: f32[2,32,32], index: 9, kind: input, shape index: {}]   ;;  %s6164_s10 = inlined_call_operand.vmem [shape: f32[2,1,32], index: 10, kind: input, shape index: {}]   ;;  %s6165_s11 = inlined_call_operand.vmem [shape: f32[2,32,64], index: 11, kind: input, shape index: {}]   ;;  %s6166_s12 = inlined_call_operand.vmem [shape: f32[2,1,64], index: 12, kind: input, shape index: {}]   ;;  %s6167_s13 = inlined_call_operand.vmem [shape: f32[2,32,32], index: 13, kind: input, shape index: {}]   ;;  %s6168_s14 = inlined_call_operand.vmem [shape: f32[2,1,32], index: 14, kind: input, shape index: {}]   ;;  %s6169_s15 = inlined_call_operand.vmem [shape: f32[2,1,32], index: 15, kind: input, shape index: {}]   ;;  %s6170_s16 = inlined_call_operand.vmem [shape: f32[2,1,32], index: 16, kind: input, shape index: {}]   ;;  %s6171_s17 = inlined_call_operand.vmem [shape: f32[2,32,64], index: 17, kind: input, shape index: {}]   ;;  %s6172_s18 = inlined_call_operand.vmem [shape: f32[2,1,64], index: 18, kind: input, shape index: {}]   ;;  %s6173_s19 = inlined_call_operand.vmem [shape: f32[2,64,32], index: 19, kind: input, shape index: {}]   ;;  %s6174_s20 = inlined_call_operand.vmem [shape: f32[2,1,32], index: 20, kind: input, shape index: {}]   ;;  %s6175_s21 = inlined_call_operand.vmem [shape: f32[2,8,32], index: 21, kind: output, shape index: {0}]   ;;  %s6176_s22 = inlined_call_operand.vmem [shape: f32[2,2,8,32], index: 22, kind: output, shape index: {1}]  }
   0x1   :  { %6183 = sst [smem:[#allocation6_spill]] %s6154_s0 }
   0x2   :  { %6184 = sst [smem:[#allocation7_spill]] %s6155_s1 }
   0x3   :  { %6185 = sst [smem:[#allocation8_spill]] %s6156_s2 }
   0x4   :  { %6186 = sst [smem:[#allocation9_spill]] %s6157_s3  ;;  %s5522_s3 = smov 0  }
   0x5   :  { %6187 = sst [smem:[#allocation10_spill]] %s6158_s4 }
   0x6   :  { %6188 = sst [smem:[#allocation11_spill]] %s6159_s5 }
   0x7   :  { %6189 = sst [smem:[#allocation12_spill]] %s6160_s6 }
   0x8   :  { %6190 = sst [smem:[#allocation13_spill]] %s6163_s9 }
   0x9   :  { %6191 = sst [smem:[#allocation14_spill]] %s6164_s10 }
   0xa   :  { %6192 = sst [smem:[#allocation15_spill]] %s6165_s11 }
   0xb   :  { %6193 = sst [smem:[#allocation16_spill]] %s6167_s13 }
   0xc   :  { %6194 = sst [smem:[#allocation17_spill]] %s6168_s14 }
   0xd   :  { %6195 = sst [smem:[#allocation18_spill]] %s6170_s16 }
   0xe   :  { %6196 = sst [smem:[#allocation19_spill]] %s6173_s19 }
   0xf   :  { %6197 = sst [smem:[#allocation20_spill]] %s6174_s20 }
  0x10   :  { %6198 = sst [smem:[#allocation21_spill]] %s6175_s21 }
  0x11   :  { %6199 = sst [smem:[#allocation22_spill]] %s6176_s22 }
  0x12 LB: > { %6200 = sst [smem:[#allocation4_spill]] %s5389_s3  ;;  %s5528_s28 = sadd.s32 4294967295, %s5389_s3   ;;  %s5389_s3 = sphi %s5522_s3, %s33_s3  }
  0x13   : > { %6201 = sst [smem:[#allocation5_spill]] %s5528_s28  ;;  %p4751_p0 = scmp.ge.s32.totalorder %s5389_s3, 1 }
  0x14   : > { %p758_p1 = scmp.lt.s32.totalorder %s5389_s3, 3 }
  0x16   : > { %p759_p2 = pnand %p4751_p0, %p758_p1 }
  0x17   : > { %p883_p3 = scmp.lt.s32.totalorder (!%p759_p2), %s5528_s28, 1  ;;  %s6203_s6 = sld [smem:[#allocation9_spill]] (!%p759_p2) }
  0x18   : > { %762 = sbr.rel (%p759_p2) target bundleno = 7394 (0x1ce2), region = 104  ;;  %s6204_s27 = sld [smem:[#allocation11_spill]] (!%p759_p2) }
  0x19   : > { %s6206_s9 = sld [smem:[#allocation13_spill]] (!%p759_p2)  ;;  %s6208_s11 = sld [smem:[#allocation15_spill]] (!%p759_p2) }
  0x1a   : > { %s6209_s13 = sld [smem:[#allocation16_spill]] (!%p759_p2)  ;;  %s6213_s21 = sld [smem:[#allocation20_spill]] (!%p759_p2) }
  0x1b   : > { %s6214_s10 = sld [smem:[#allocation22_spill]] (!%p759_p2)  ;;  %s6215_s19 = sld [smem:[#allocation5_spill]] (!%p759_p2) }
  0x1f   : > { %s5534_s29 = scalar_select %p883_p3, %s5528_s28, 1 }
  0x21   : > { %s4844_s30 = sshll.u32 %s5534_s29, 5  ;;  %s950_s28 = scalar_lea.vmem %s6213_s21, %s5534_s29 }
  0x22   : > { %s5544_s25 = scalar_lea.vmem %s6203_s6, %s4844_s30  ;;  %s5549_s3 = scalar_lea.vmem %s6204_s27, %s4844_s30 }
  0x23   : > { %s5566_s26 = scalar_lea.vmem %s6206_s9, %s4844_s30  ;;  %s5575_s20 = scalar_lea.vmem %s6208_s11, %s4844_s30 }
  0x24   : > { %s5584_s24 = scalar_lea.vmem %s6209_s13, %s4844_s30  ;;  %s5601_s4 = scalar_lea.vmem %s6171_s17, %s4844_s30 }
  0x25   : > { %s4850_s13 = sshll.u32 %s5534_s29, 6  ;;  %s6212_s9 = sld [smem:[#allocation19_spill]] }
  0x26   : > { %s4851_s22 = sshll.u32 %s5534_s29, 4  ;;  %p4768_p4 = scmp.ne.s32.totalorder %s6215_s19, 0 }
  0x27   : > { %s955_s30 = scalar_lea.vmem %s6214_s10, %s4851_s22  ;;  %s6216_s0 = sld [smem:[#allocation6_spill]] (!%p4768_p4)  ;;  %vm962_vm0 = vcmask (!%p4768_p4), 261120  }
  0x28   : > { %959 = sbr.rel (%p4768_p4) target bundleno = 47 (0x2f), region = 108 }
  0x2b   : > { %s5611_s14 = scalar_lea.vmem %s6212_s9, %s4850_s13 }
  0x2d   : > { %v960_v0 = vld [vmem:[%s6216_s0] sm:$0xff] (!%p4768_p4)  ;;  %v961_v1 = vld [vmem:[%s6216_s0 + $0x8] sm:$0xff] (!%p4768_p4) }
  0x2e   : > { %963 = vst.msk [vmem:[#allocation2] sm:$0xff] (!%p4768_p4), %vm962_vm0, %v960_v0  ;;  %964 = vst.msk [vmem:[#allocation2 + $0x8] sm:$0xff] (!%p4768_p4), %vm962_vm0, %v961_v1 }
  0x2f PF: > { %v974_v2 = vld [vmem:[%s5544_s25] sm:$0xff]  ;;  %v975_v3 = vld [vmem:[%s5544_s25 + $0x8] sm:$0xff]  ;;  %v976_v4 = vld [vmem:[%s5544_s25 + $0x10] sm:$0xff]  ;;  %vm967_vm1 = vcmask 261120   ;;  %v5391_v10 = vmov 0.0   ;;  %vm5392_vm2 = vmmov 0  }
  0x30   : > { %v5207_v5 = vpack.c.bf16 %v975_v3, %v974_v2  ;;  %v977_v6 = vld [vmem:[%s5544_s25 + $0x18] sm:$0xff]  ;;  %4983 = vmatprep.subr.mxu0 %v5391_v10  ;;  %4985 = vmatprep.mubr.msk.f32.mxu0 %vm5392_vm2, %v5391_v10  ;;  %s6217_s16 = sld [smem:[#allocation10_spill]]  ;;  %s5393_s21 = smov 96   ;;  %vm1071_vm3 = vcmask 64512   ;;  %vm1739_vm4 = vcmask 130112   ;;  %vm2080_vm5 = vcmask 195712  }
  0x31   : > { %v5211_v9 = vpack.c.bf16 %v977_v6, %v976_v4  ;;  %s5394_s6 = smov 64   ;;  %s5395_s2 = smov 88   ;;  %vm2421_vm6 = vcmask 261312   ;;  %vm4381_vm15 = vcmask 523264  }
  0x32   : > { %5208 = vmatprep.subr.bf16.mxu1 %v5207_v5  ;;  %s5396_s27 = smov 120   ;;  %s5397_s22 = smov 56  }
  0x33   : > { %5210 = vmatpush3.bf16.msra.mxu1 %v5207_v5  ;;  %s5398_s10 = smov 80   ;;  %s5400_s19 = smov 48  }
  0x34   : > { %5212 = vmatprep.subr.bf16.mxu1 %v5211_v9  ;;  %s5401_s23 = smov 72   ;;  %s5402_s5 = smov 104  }
  0x35   : > { %v5632_v7 = vld [vmem:[#allocation2] sm:$0xff]  ;;  %v5634_v8 = vld [vmem:[#allocation2 + $0x8] sm:$0xff]  ;;  %s5403_s1 = smov 40   ;;  %s5404_s9 = smov 8  }
  0x36   : > { %968 = vst.msk [vmem:[%s955_s30] sm:$0xff] %vm967_vm1, %v5632_v7  ;;  %4970 = vmatprep.mubr.msk.f32.mxu1 %vm967_vm1, %v5632_v7  ;;  %969 = vst.msk [vmem:[%s955_s30 + $0x8] sm:$0xff] %vm967_vm1, %v5634_v8  ;;  %s6218_s25 = scalar_lea.vmem %s6217_s16, %s5534_s29  ;;  %s5399_s30 = smov 112  }
  0x37   : > { %5214 = vmatpush3.bf16.msra.mxu1 %v5211_v9  ;;  %v4769_v11 = vld [vmem:[%s6218_s25] ss:$0 sm:$0xff]  ;;  %s5405_s11 = smov 16   ;;  %s5406_s13 = smov 24  }
  0x38   : > { %4973 = vmatprep.subr.mxu1 %v5391_v10  ;;  %s6219_s25 = sld [smem:[#allocation12_spill]] }
  0x3a   : > { %4971 = vmatmul.mubr.msk.f32.vlgmr.msra.gmra.mrb[0].mxu1 %vm967_vm1, %v5634_v8 }
  0x3b   : > { %4975 = vmatprep.mubr.msk.f32.mxu1 %vm5392_vm2, %v5391_v10 }
 0x10d   : > { %v4972_v12 = vpop.f32.mrb[0].mxu1 }
 0x10e   : > { %v1057_v13 = vpop.f32.mrb[1].mxu1  ;;  %v5659_v15 = vadd.f32 %v4972_v12, %v4769_v11 }
 0x10f   : > { %v5655_v14 = vadd.f32 %v4769_v11, %v1057_v13 }
 0x110   : > { %v5674_v19 = vmul.f32 0.35355338, %v5659_v15 }
 0x111   : > { %1069 = vrot.lane.b32.xlu0 %v5655_v14, %s5393_s21  ;;  %v5666_v17 = vmul.f32 0.35355338, %v5655_v14 }
 0x115   : > { %1148 = vrot.lane.b32.xlu0 %v5659_v15, %s5393_s21 }
 0x183   : > { %v1070_v16 = vpop.permute.xlu0 %1069 }
 0x184   : > { %4974 = vmatpush3.xpose.msk.msra.mxu1 %vm1071_vm3, %v1070_v16 }
 0x185   : > { %4978 = vmatprep.subr.mxu1 %v5391_v10 }
 0x187   : > { %v1149_v18 = vpop.permute.xlu0 %1148  ;;  %4976 = vmatmul.mubr.msk.f32.vlgmr.msra.gmra.mrb[2].mxu1 %vm1071_vm3, %v5666_v17 }
 0x188   : > { %4979 = vmatpush3.xpose.msk.msra.mxu1 %vm1071_vm3, %v1149_v18  ;;  %4980 = vmatprep.mubr.msk.f32.mxu1 %vm5392_vm2, %v5391_v10 }
 0x189   : > { %4988 = vmatprep.subr.mxu1 %v5391_v10 }
 0x18b   : > { %4981 = vmatmul.mubr.msk.f32.vlgmr.msra.gmra.mrb[4].mxu1 %vm1071_vm3, %v5674_v19 }
 0x18c   : > { %4990 = vmatprep.mubr.msk.f32.mxu1 %vm5392_vm2, %v5391_v10 }
 0x25a   : > { %v1143_v20 = vpop.f32.mrb[2].mxu1 }
 0x25b   : > { %v4977_v21 = vpop.f32.mrb[3].mxu1  ;;  %v1225_v22 = vsel %vm1071_vm3, %v1143_v20, -inf }
 0x25c   : > { %1226 = vmax.xlane.f32.xlu1 %v1225_v22 }
 0x25e   : > { %v1221_v23 = vpop.f32.mrb[4].mxu1 }
 0x25f   : > { %v4982_v24 = vpop.f32.mrb[5].mxu1  ;;  %v1228_v25 = vsel %vm1071_vm3, %v1221_v23, -inf }
 0x260   : > { %1229 = vmax.xlane.f32.xlu1 %v1228_v25 }
 0x271   : > { %1247 = vrot.lane.b32.xlu1 %v5655_v14, %s5394_s6 }
 0x275   : > { %1323 = vrot.lane.b32.xlu1 %v5659_v15, %s5394_s6  ;;  %s6220_s6 = scalar_lea.vmem %s6219_s25, %s5534_s29  ;;  %s6222_s25 = scalar_lea.vmem %s6161_s7, %s5534_s29 }
 0x279   : > { %1403 = vrot.lane.b32.xlu1 %v5655_v14, %s5395_s2 }
 0x27d   : > { %1481 = vrot.lane.b32.xlu1 %v5659_v15, %s5395_s2 }
 0x2e9   : > { %v1227_v26 = vpop.xlane.xlu1 %1226 }
 0x2ea   : > { %v1231_v27 = vsub.f32 %v1143_v20, %v1227_v26 }
 0x2ec   : > { %v1233_v28 = vmul.f32 1.442695, %v1231_v27 }
 0x2ed   : > { %v1230_v29 = vpop.xlane.xlu1 %1229 }
 0x2ee   : > { %5295 = vpow2.f32 %v1233_v28  ;;  %v1232_v30 = vsub.f32 %v1221_v23, %v1230_v29 }
 0x2f0   : > { %v1235_v31 = vmul.f32 1.442695, %v1232_v30 }
 0x2f1   : > { %v1248_v32 = vpop.permute.xlu1 %1247 }
 0x2f2   : > { %5297 = vpow2.f32 %v1235_v31  ;;  %4984 = vmatpush3.msra.mxu0 %v1248_v32 }
 0x2f3   : > { %4993 = vmatprep.subr.mxu0 %v5391_v10 }
 0x2f5   : > { %v1324_v33 = vpop.permute.xlu1 %1323 }
 0x2f6   : > { %4989 = vmatpush3.msra.mxu1 %v1324_v33 }
 0x2f7   : > { %4998 = vmatprep.subr.mxu1 %v5391_v10 }
 0x2f8   : > { %v5296_v34 = vpop.eup %5295 }
 0x2f9   : > { %v1237_v35 = vsel %vm1071_vm3, %v5296_v34, 0.0  ;;  %v1404_v38 = vpop.permute.xlu1 %1403 }
 0x2fa   : > { %1238 = vadd.xlane.f32.xlu0 %v1237_v35 }
 0x2fc   : > { %v5298_v36 = vpop.eup %5297 }
 0x2fd   : > { %v1240_v37 = vsel %vm1071_vm3, %v5298_v36, 0.0  ;;  %v1482_v39 = vpop.permute.xlu1 %1481 }
 0x2fe   : > { %1241 = vadd.xlane.f32.xlu1 %v1240_v37 }
 0x30f   : > { %1479 = vrot.lane.b32.xlu1 %v5674_v19, %s5396_s27 }
 0x310   : > { %1401 = vrot.lane.b32.xlu0 %v5666_v17, %s5396_s27 }
 0x387   : > { %v1239_v40 = vpop.xlane.xlu0 %1238 }
 0x388   : > { %5299 = vrcp.f32 %v1239_v40 }
 0x38b   : > { %v1242_v41 = vpop.xlane.xlu1 %1241  ;;  %v1402_v46 = vpop.permute.xlu0 %1401 }
 0x38c   : > { %5301 = vrcp.f32 %v1242_v41 }
 0x38f   : > { %v1480_v47 = vpop.permute.xlu1 %1479 }
 0x392   : > { %v5300_v42 = vpop.eup %5299 }
 0x393   : > { %v1245_v43 = vmul.f32 %v5300_v42, %v5296_v34 }
 0x395   : > { %4986 = vmatmul.mubr.msk.f32.vlgmr.msra.gmra.mrb[0].mxu0 %vm1071_vm3, %v1245_v43 }
 0x396   : > { %v5302_v44 = vpop.eup %5301  ;;  %4994 = vmatpush3.xpose.msk.msra.mxu0 %vm1071_vm3, %v1404_v38  ;;  %4995 = vmatprep.mubr.msk.f32.mxu0 %vm5392_vm2, %v5391_v10 }
 0x397   : > { %v1246_v45 = vmul.f32 %v5302_v44, %v5298_v36  ;;  %5003 = vmatprep.subr.mxu0 %v5391_v10 }
 0x399   : > { %4991 = vmatmul.mubr.msk.f32.vlgmr.msra.gmra.mrb[6].mxu1 %vm1071_vm3, %v1246_v45  ;;  %4996 = vmatmul.mubr.msk.f32.vlgmr.msra.gmra.mrb[2].mxu0 %vm1071_vm3, %v1402_v46 }
 0x39a   : > { %4999 = vmatpush3.xpose.msk.msra.mxu1 %vm1071_vm3, %v1482_v39  ;;  %5000 = vmatprep.mubr.msk.f32.mxu1 %vm5392_vm2, %v5391_v10 }
 0x39b   : > { %5008 = vmatprep.subr.mxu1 %v5391_v10  ;;  %5005 = vmatprep.mubr.msk.f32.mxu0 %vm5392_vm2, %v5391_v10 }
 0x39d   : > { %5001 = vmatmul.mubr.msk.f32.vlgmr.msra.gmra.mrb[8].mxu1 %vm1071_vm3, %v1480_v47 }
 0x39e   : > { %5010 = vmatprep.mubr.msk.f32.mxu1 %vm5392_vm2, %v5391_v10 }
 0x468   : > { %v1319_v48 = vpop.f32.mrb[0].mxu0 }
 0x469   : > { %1399 = vst.msk [vmem:[#allocation3] sm:$0xff] %vm1071_vm3, %v1319_v48  ;;  %v4987_v49 = vpop.f32.mrb[1].mxu0 }
 0x46c   : > { %v1395_v50 = vpop.f32.mrb[6].mxu1  ;;  %v1475_v51 = vpop.f32.mrb[2].mxu0 }
 0x46d   : > { %1400 = vst.msk [vmem:[#allocation3 + $0x8] sm:$0xff] %vm1071_vm3, %v1395_v50  ;;  %v4992_v52 = vpop.f32.mrb[7].mxu1  ;;  %v4997_v53 = vpop.f32.mrb[3].mxu0  ;;  %v1557_v54 = vsel %vm1071_vm3, %v1475_v51, -inf }
 0x46e   : > { %1558 = vmax.xlane.f32.xlu1 %v1557_v54 }
 0x470   : > { %v1553_v55 = vpop.f32.mrb[8].mxu1 }
 0x471   : > { %v5002_v56 = vpop.f32.mrb[9].mxu1  ;;  %v1560_v57 = vsel %vm1071_vm3, %v1553_v55, -inf }
 0x472   : > { %1561 = vmax.xlane.f32.xlu0 %v1560_v57 }
 0x47f   : > { %1579 = vrot.lane.b32.xlu1 %v5655_v14, %s5397_s22 }
 0x483   : > { %1744 = vrot.lane.b32.xlu1 %v5655_v14, %s5398_s10 }
 0x487   : > { %1822 = vrot.lane.b32.xlu1 %v5659_v15, %s5398_s10 }
 0x488   : > { %1655 = vrot.lane.b32.xlu0 %v5659_v15, %s5397_s22 }
 0x48c   : > { %1742 = vrot.lane.b32.xlu0 %v5666_v17, %s5399_s30 }
 0x4fb   : > { %v1559_v58 = vpop.xlane.xlu1 %1558 }
 0x4fc   : > { %v1563_v59 = vsub.f32 %v1475_v51, %v1559_v58 }
 0x4fe   : > { %v1565_v60 = vmul.f32 1.442695, %v1563_v59 }
 0x4ff   : > { %v1580_v61 = vpop.permute.xlu1 %1579  ;;  %v1562_v62 = vpop.xlane.xlu0 %1561 }
 0x500   : > { %5303 = vpow2.f32 %v1565_v60  ;;  %v1564_v63 = vsub.f32 %v1553_v55, %v1562_v62  ;;  %5004 = vmatpush3.msra.mxu0 %v1580_v61 }
 0x501   : > { %5013 = vmatprep.subr.mxu0 %v5391_v10 }
 0x502   : > { %v1567_v0 = vmul.f32 1.442695, %v1564_v63 }
 0x503   : > { %v1656_v1 = vpop.permute.xlu0 %1655  ;;  %v1745_v6 = vpop.permute.xlu1 %1744 }
 0x504   : > { %5305 = vpow2.f32 %v1567_v0  ;;  %5009 = vmatpush3.msra.mxu1 %v1656_v1 }
 0x505   : > { %5018 = vmatprep.subr.mxu1 %v5391_v10 }
 0x507   : > { %v1823_v9 = vpop.permute.xlu1 %1822  ;;  %v1743_v21 = vpop.permute.xlu0 %1742 }
 0x50a   : > { %v5304_v2 = vpop.eup %5303 }
 0x50b   : > { %v1569_v3 = vsel %vm1071_vm3, %v5304_v2, 0.0 }
 0x50c   : > { %1570 = vadd.xlane.f32.xlu1 %v1569_v3 }
 0x50e   : > { %v5306_v4 = vpop.eup %5305 }
 0x50f   : > { %v1572_v5 = vsel %vm1071_vm3, %v5306_v4, 0.0 }
 0x510   : > { %1573 = vadd.xlane.f32.xlu1 %v1572_v5 }
 0x521   : > { %1820 = vrot.lane.b32.xlu1 %v5674_v19, %s5399_s30 }
 0x599   : > { %v1571_v11 = vpop.xlane.xlu1 %1570 }
 0x59a   : > { %5307 = vrcp.f32 %v1571_v11 }
 0x59d   : > { %v1574_v12 = vpop.xlane.xlu1 %1573 }
 0x59e   : > { %5309 = vrcp.f32 %v1574_v12 }
 0x5a1   : > { %v1821_v22 = vpop.permute.xlu1 %1820 }
 0x5a4   : > { %v5308_v13 = vpop.eup %5307 }
 0x5a5   : > { %v1577_v16 = vmul.f32 %v5308_v13, %v5304_v2 }
 0x5a7   : > { %5006 = vmatmul.mubr.msk.f32.vlgmr.msra.gmra.mrb[4].mxu0 %vm1071_vm3, %v1577_v16 }
 0x5a8   : > { %v5310_v18 = vpop.eup %5309  ;;  %5014 = vmatpush3.xpose.msk.msra.mxu0 %vm1071_vm3, %v1745_v6  ;;  %5015 = vmatprep.mubr.msk.f32.mxu0 %vm5392_vm2, %v5391_v10 }
 0x5a9   : > { %v1578_v20 = vmul.f32 %v5310_v18, %v5306_v4  ;;  %5023 = vmatprep.subr.mxu0 %v5391_v10 }
 0x5ab   : > { %5011 = vmatmul.mubr.msk.f32.vlgmr.msra.gmra.mrb[10].mxu1 %vm1071_vm3, %v1578_v20  ;;  %5016 = vmatmul.mubr.msk.f32.vlgmr.msra.gmra.mrb[6].mxu0 %vm1071_vm3, %v1743_v21 }
 0x5ac   : > { %5019 = vmatpush3.xpose.msk.msra.mxu1 %vm1071_vm3, %v1823_v9  ;;  %5020 = vmatprep.mubr.msk.f32.mxu1 %vm5392_vm2, %v5391_v10 }
 0x5ad   : > { %5028 = vmatprep.subr.mxu1 %v5391_v10  ;;  %5025 = vmatprep.mubr.msk.f32.mxu0 %vm5392_vm2, %v5391_v10 }
 0x5af   : > { %5021 = vmatmul.mubr.msk.f32.vlgmr.msra.gmra.mrb[12].mxu1 %vm1071_vm3, %v1821_v22 }
 0x5b0   : > { %5030 = vmatprep.mubr.msk.f32.mxu1 %vm5392_vm2, %v5391_v10 }
 0x67a   : > { %v5747_v23 = vpop.f32.mrb[4].mxu0 }
 0x67b   : > { %v5007_v24 = vpop.f32.mrb[5].mxu0 }
 0x67e   : > { %v5749_v25 = vpop.f32.mrb[10].mxu1  ;;  %v1816_v26 = vpop.f32.mrb[6].mxu0 }
 0x67f   : > { %v5012_v27 = vpop.f32.mrb[11].mxu1  ;;  %v5017_v28 = vpop.f32.mrb[7].mxu0  ;;  %v1898_v29 = vsel %vm1071_vm3, %v1816_v26, -inf }
 0x680   : > { %1899 = vmax.xlane.f32.xlu0 %v1898_v29  ;;  %v2427_v27 = vld [vmem:[%s5549_s3 + $0x8] sm:$0xff]  ;;  %v2428_v29 = vld [vmem:[%s5549_s3 + $0x10] sm:$0xff] }
 0x682   : > { %v1894_v30 = vpop.f32.mrb[12].mxu1 }
 0x683   : > { %v5022_v31 = vpop.f32.mrb[13].mxu1  ;;  %v1901_v32 = vsel %vm1071_vm3, %v1894_v30, -inf }
 0x684   : > { %1902 = vmax.xlane.f32.xlu1 %v1901_v32 }
 0x695   : > { %1920 = vrot.lane.b32.xlu1 %v5655_v14, %s5400_s19 }
 0x696   : > { %1996 = vrot.lane.b32.xlu0 %v5659_v15, %s5400_s19  ;;  %s6223_s19 = scalar_lea.vmem %s6162_s8, %s5534_s29 }
 0x699   : > { %2085 = vrot.lane.b32.xlu1 %v5655_v14, %s5401_s23 }
 0x69d   : > { %2163 = vrot.lane.b32.xlu1 %v5659_v15, %s5401_s23 }
 0x6a1   : > { %2161 = vrot.lane.b32.xlu1 %v5674_v19, %s5402_s5 }
 0x70d   : > { %v1900_v33 = vpop.xlane.xlu0 %1899 }
 0x70e   : > { %v1904_v34 = vsub.f32 %v1816_v26, %v1900_v33  ;;  %v2426_v26 = vld [vmem:[%s5549_s3] sm:$0xff] }
 0x70f   : > { %v5215_v28 = vpack.c.bf16 %v2427_v27, %v2426_v26 }
 0x710   : > { %v1906_v35 = vmul.f32 1.442695, %v1904_v34 }
 0x711   : > { %v1997_v36 = vpop.permute.xlu0 %1996  ;;  %v1903_v37 = vpop.xlane.xlu1 %1902 }
 0x712   : > { %5311 = vpow2.f32 %v1906_v35  ;;  %v1905_v38 = vsub.f32 %v1894_v30, %v1903_v37  ;;  %5029 = vmatpush3.msra.mxu1 %v1997_v36  ;;  %v2429_v30 = vld [vmem:[%s5549_s3 + $0x18] sm:$0xff]  ;;  %s6224_s3 = scalar_lea.vmem %s6166_s12, %s5534_s29 }
 0x713   : > { %5038 = vmatprep.subr.mxu1 %v5391_v10  ;;  %v5219_v31 = vpack.c.bf16 %v2429_v30, %v2428_v29 }
 0x714   : > { %v1908_v39 = vmul.f32 1.442695, %v1905_v38 }
 0x715   : > { %v1921_v40 = vpop.permute.xlu1 %1920 }
 0x716   : > { %5313 = vpow2.f32 %v1908_v39  ;;  %5024 = vmatpush3.msra.mxu0 %v1921_v40  ;;  %v4796_v40 = vld [vmem:[%s6220_s6] ss:$0 sm:$0xff]  ;;  %s6225_s6 = sld [smem:[#allocation14_spill]] }
 0x717   : > { %5033 = vmatprep.subr.mxu0 %v5391_v10 }
 0x719   : > { %v2086_v46 = vpop.permute.xlu1 %2085 }
 0x71c   : > { %v5312_v41 = vpop.eup %5311  ;;  %s6226_s22 = scalar_lea.vmem %s6225_s6, %s5534_s29  ;;  %s6233_s6 = scalar_lea.vmem %s6172_s18, %s5534_s29 }
 0x71d   : > { %v1910_v42 = vsel %vm1071_vm3, %v5312_v41, 0.0  ;;  %v2164_v50 = vpop.permute.xlu1 %2163 }
 0x71e   : > { %1911 = vadd.xlane.f32.xlu0 %v1910_v42 }
 0x720   : > { %v5314_v19 = vpop.eup %5313 }
 0x721   : > { %v1913_v43 = vsel %vm1071_vm3, %v5314_v19, 0.0  ;;  %v2162_v52 = vpop.permute.xlu1 %2161 }
 0x722   : > { %1914 = vadd.xlane.f32.xlu0 %v1913_v43 }
 0x738   : > { %2083 = vrot.lane.b32.xlu0 %v5666_v17, %s5402_s5 }
 0x7ab   : > { %v1912_v44 = vpop.xlane.xlu0 %1911 }
 0x7ac   : > { %5315 = vrcp.f32 %v1912_v44 }
 0x7af   : > { %v1915_v45 = vpop.xlane.xlu0 %1914 }
 0x7b0   : > { %5317 = vrcp.f32 %v1915_v45 }
 0x7b3   : > { %v2084_v17 = vpop.permute.xlu0 %2083 }
 0x7b6   : > { %v5316_v47 = vpop.eup %5315 }
 0x7b7   : > { %v1918_v48 = vmul.f32 %v5316_v47, %v5312_v41 }
 0x7b9   : > { %5026 = vmatmul.mubr.msk.f32.vlgmr.msra.gmra.mrb[8].mxu0 %vm1071_vm3, %v1918_v48 }
 0x7ba   : > { %v5318_v49 = vpop.eup %5317  ;;  %5034 = vmatpush3.xpose.msk.msra.mxu0 %vm1071_vm3, %v2086_v46  ;;  %5035 = vmatprep.mubr.msk.f32.mxu0 %vm5392_vm2, %v5391_v10 }
 0x7bb   : > { %v1919_v51 = vmul.f32 %v5318_v49, %v5314_v19  ;;  %5043 = vmatprep.subr.mxu0 %v5391_v10 }
 0x7bd   : > { %5031 = vmatmul.mubr.msk.f32.vlgmr.msra.gmra.mrb[14].mxu1 %vm1071_vm3, %v1919_v51  ;;  %5036 = vmatmul.mubr.msk.f32.vlgmr.msra.gmra.mrb[10].mxu0 %vm1071_vm3, %v2084_v17 }
 0x7be   : > { %5039 = vmatpush3.xpose.msk.msra.mxu1 %vm1071_vm3, %v2164_v50  ;;  %5040 = vmatprep.mubr.msk.f32.mxu1 %vm5392_vm2, %v5391_v10 }
 0x7bf   : > { %5048 = vmatprep.subr.mxu1 %v5391_v10  ;;  %5045 = vmatprep.mubr.msk.f32.mxu0 %vm5392_vm2, %v5391_v10 }
 0x7c1   : > { %5041 = vmatmul.mubr.msk.f32.vlgmr.msra.gmra.mrb[16].mxu1 %vm1071_vm3, %v2162_v52 }
 0x7c2   : > { %5050 = vmatprep.mubr.msk.f32.mxu1 %vm5392_vm2, %v5391_v10 }
 0x88c   : > { %v1992_v53 = vpop.f32.mrb[8].mxu0 }
 0x88d   : > { %v5027_v54 = vpop.f32.mrb[9].mxu0 }
 0x890   : > { %v2068_v55 = vpop.f32.mrb[14].mxu1  ;;  %v2157_v56 = vpop.f32.mrb[10].mxu0 }
 0x891   : > { %v5032_v57 = vpop.f32.mrb[15].mxu1  ;;  %v5037_v58 = vpop.f32.mrb[11].mxu0  ;;  %v2239_v59 = vsel %vm1071_vm3, %v2157_v56, -inf }
 0x892   : > { %2240 = vmax.xlane.f32.xlu0 %v2239_v59  ;;  %v2582_v57 = vld [vmem:[%s5566_s26] sm:$0xff]  ;;  %v2583_v59 = vld [vmem:[%s5566_s26 + $0x8] sm:$0xff] }
 0x894   : > { %v2235_v60 = vpop.f32.mrb[16].mxu1 }
 0x895   : > { %v5042_v61 = vpop.f32.mrb[17].mxu1  ;;  %v2242_v62 = vsel %vm1071_vm3, %v2235_v60, -inf }
 0x896   : > { %2243 = vmax.xlane.f32.xlu1 %v2242_v62  ;;  %v2677_v61 = vld [vmem:[%s5575_s20 + $0x18] sm:$0xff]  ;;  %v5223_v62 = vpack.c.bf16 %v2583_v59, %v2582_v57 }
 0x8a7   : > { %2261 = vrot.lane.b32.xlu1 %v5655_v14, %s5403_s1 }
 0x8ab   : > { %1733 = vrot.lane.b32.xlu1 %v5747_v23, %s5404_s9 }
 0x8af   : > { %1735 = vrot.lane.b32.xlu1 %v5749_v25, %s5404_s9 }
 0x8b3   : > { %2076 = vrot.lane.b32.xlu1 %v2068_v55, %s5405_s11  ;;  %v2674_v55 = vld [vmem:[%s5575_s20] sm:$0xff] }
 0x91f   : > { %v2241_v63 = vpop.xlane.xlu0 %2240 }
 0x920   : > { %v2245_v0 = vsub.f32 %v2157_v56, %v2241_v63  ;;  %v2675_v56 = vld [vmem:[%s5575_s20 + $0x8] sm:$0xff] }
 0x921   : > { %v5231_v58 = vpack.c.bf16 %v2675_v56, %v2674_v55 }
 0x922   : > { %v2247_v1 = vmul.f32 1.442695, %v2245_v0  ;;  %v2584_v0 = vld [vmem:[%s5566_s26 + $0x10] sm:$0xff] }
 0x923   : > { %v2244_v2 = vpop.xlane.xlu1 %2243 }
 0x924   : > { %5319 = vpow2.f32 %v2247_v1  ;;  %v2246_v3 = vsub.f32 %v2235_v60, %v2244_v2  ;;  %v2676_v60 = vld [vmem:[%s5575_s20 + $0x10] sm:$0xff]  ;;  %v2585_v1 = vld [vmem:[%s5566_s26 + $0x18] sm:$0xff]  ;;  %s6221_s20 = sld [smem:[#allocation7_spill]]  ;;  %s6235_s26 = sld [smem:[#allocation21_spill]] }
 0x925   : > { %v5235_v63 = vpack.c.bf16 %v2677_v61, %v2676_v60  ;;  %v5227_v2 = vpack.c.bf16 %v2585_v1, %v2584_v0 }
 0x926   : > { %v2249_v4 = vmul.f32 1.442695, %v2246_v3 }
 0x927   : > { %v2262_v5 = vpop.permute.xlu1 %2261 }
 0x928   : > { %5321 = vpow2.f32 %v2249_v4  ;;  %5044 = vmatpush3.msra.mxu0 %v2262_v5 }
 0x929   : > { %5216 = vmatprep.subr.bf16.mxu0 %v5215_v28 }
 0x92a   : > { %v970_v3 = vld [vmem:[%s6221_s20] sm:$0xff]  ;;  %v971_v4 = vld [vmem:[%s6221_s20 + $0x8] sm:$0xff] }
 0x92b   : > { %v1734_v14 = vpop.permute.xlu1 %1733 }
 0x92c   : > { %1740 = vst.msk [vmem:[#allocation3] sm:$0xff] %vm1739_vm4, %v1734_v14 }
 0x92e   : > { %v5320_v6 = vpop.eup %5319 }
 0x92f   : > { %v1736_v9 = vpop.permute.xlu1 %1735  ;;  %v2251_v11 = vsel %vm1071_vm3, %v5320_v6, 0.0 }
 0x930   : > { %1741 = vst.msk [vmem:[#allocation3 + $0x8] sm:$0xff] %vm1739_vm4, %v1736_v9  ;;  %2252 = vadd.xlane.f32.xlu0 %v2251_v11 }
 0x932   : > { %v5322_v12 = vpop.eup %5321 }
 0x933   : > { %v2077_v13 = vpop.permute.xlu1 %2076  ;;  %v2254_v16 = vsel %vm1071_vm3, %v5322_v12, 0.0 }
 0x934   : > { %2082 = vst.msk [vmem:[#allocation3 + $0x8] sm:$0xff] %vm2080_vm5, %v2077_v13  ;;  %2255 = vadd.xlane.f32.xlu0 %v2254_v16 }
 0x94a   : > { %2337 = vrot.lane.b32.xlu0 %v5659_v15, %s5403_s1  ;;  %s6227_s1 = sld [smem:[#allocation8_spill]] }
 0x94e   : > { %2074 = vrot.lane.b32.xlu0 %v1992_v53, %s5405_s11 }
 0x9bd   : > { %v2253_v18 = vpop.xlane.xlu0 %2252 }
 0x9be   : > { %5323 = vrcp.f32 %v2253_v18 }
 0x9c1   : > { %v2256_v20 = vpop.xlane.xlu0 %2255 }
 0x9c2   : > { %5325 = vrcp.f32 %v2256_v20 }
 0x9c5   : > { %v2338_v21 = vpop.permute.xlu0 %2337 }
 0x9c6   : > { %5049 = vmatpush3.msra.mxu1 %v2338_v21 }
 0x9c7   : > { %5224 = vmatprep.subr.bf16.mxu1 %v5223_v62 }
 0x9c8   : > { %v5324_v22 = vpop.eup %5323 }
 0x9c9   : > { %v2259_v23 = vmul.f32 %v5324_v22, %v5320_v6  ;;  %v2075_v24 = vpop.permute.xlu0 %2074 }
 0x9ca   : > { %2081 = vst.msk [vmem:[#allocation3] sm:$0xff] %vm2080_vm5, %v2075_v24 }
 0x9cb   : > { %5046 = vmatmul.mubr.msk.f32.vlgmr.msra.gmra.mrb[12].mxu0 %vm1071_vm3, %v2259_v23 }
 0x9cc   : > { %v5326_v15 = vpop.eup %5325  ;;  %5218 = vmatpush3.bf16.msra.mxu0 %v5215_v28  ;;  %v4799_v28 = vld [vmem:[%s6222_s25] ss:$0 sm:$0xff] }
 0x9cd   : > { %v2260_v25 = vmul.f32 %v5326_v15, %v5322_v12  ;;  %5220 = vmatprep.subr.bf16.mxu0 %v5219_v31 }
 0x9cf   : > { %5051 = vmatmul.mubr.msk.f32.vlgmr.msra.gmra.mrb[18].mxu1 %vm1071_vm3, %v2260_v25 }
 0x9d0   : > { %5222 = vmatpush3.bf16.msra.mxu0 %v5219_v31  ;;  %5226 = vmatpush3.bf16.msra.mxu1 %v5223_v62  ;;  %v4800_v31 = vld [vmem:[%s6223_s19] ss:$0 sm:$0xff] }
 0x9d1   : > { %5232 = vmatprep.subr.bf16.mxu0 %v5231_v58  ;;  %5228 = vmatprep.subr.bf16.mxu1 %v5227_v2 }
 0x9d4   : > { %5230 = vmatpush3.bf16.msra.mxu1 %v5227_v2 }
 0x9d5   : > { %5086 = vmatprep.subr.mxu1 %v5391_v10 }
 0xa9e   : > { %v2333_v32 = vpop.f32.mrb[12].mxu0 }
 0xa9f   : > { %2415 = vrot.lane.b32.xlu0 %v2333_v32, %s5406_s13  ;;  %v5047_v33 = vpop.f32.mrb[13].mxu0 }
 0xaa2   : > { %v2409_v34 = vpop.f32.mrb[18].mxu1 }
 0xaa3   : > { %2417 = vrot.lane.b32.xlu1 %v2409_v34, %s5406_s13  ;;  %v5052_v35 = vpop.f32.mrb[19].mxu1 }
 0xb11   : > { %v2416_v36 = vpop.permute.xlu0 %2415 }
 0xb12   : > { %2422 = vst.msk [vmem:[#allocation3] sm:$0xff] %vm2421_vm6, %v2416_v36 }
 0xb15   : > { %v2418_v37 = vpop.permute.xlu1 %2417 }
 0xb16   : > { %2423 = vst.msk [vmem:[#allocation3 + $0x8] sm:$0xff] %vm2421_vm6, %v2418_v37 }
 0xb19   : > { %v2424_v38 = vld [vmem:[#allocation3] sm:$0xff] }
 0xb1a   : > { %5061 = vmatprep.mubr.msk.f32.mxu0 %vm967_vm1, %v2424_v38  ;;  %v4804_v38 = vld [vmem:[%s6224_s3] ss:$0 sm:$0xff] }
 0xb1d   : > { %v2425_v39 = vld [vmem:[#allocation3 + $0x8] sm:$0xff] }
 0xb1e   : > { %5062 = vmatmul.mubr.msk.f32.vlgmr.msra.gmra.mrb[14].mxu0 %vm967_vm1, %v2425_v39 }
 0xb1f   : > { %5234 = vmatpush3.bf16.msra.mxu0 %v5231_v58  ;;  %5083 = vmatprep.mubr.msk.f32.mxu0 %vm967_vm1, %v970_v3 }
 0xb20   : > { %5236 = vmatprep.subr.bf16.mxu0 %v5235_v63 }
 0xb23   : > { %5238 = vmatpush3.bf16.msra.mxu0 %v5235_v63 }
 0xb24   : > { %5096 = vmatprep.subr.mxu0 %v5391_v10 }
 0xb26   : > { %5084 = vmatmul.mubr.msk.f32.vlgmr.msra.gmra.mrb[16].mxu0 %vm967_vm1, %v971_v4 }
 0xb27   : > { %5098 = vmatprep.mubr.msk.f32.mxu0 %vm5392_vm2, %v5391_v10 }
 0xbf1   : > { %v5063_v41 = vpop.f32.mrb[14].mxu0 }
 0xbf2   : > { %v2515_v42 = vadd.f32 %v5063_v41, %v4796_v40  ;;  %v2509_v19 = vpop.f32.mrb[15].mxu0 }
 0xbf3   : > { %v2510_v43 = vadd.f32 %v4796_v40, %v2509_v19  ;;  %v4801_v19 = vld [vmem:[%s6226_s22] ss:$0 sm:$0xff] }
 0xbf4   : > { %v5819_v44 = vadd.f32 %v2515_v42, %v5634_v8 }
 0xbf5   : > { %v5822_v45 = vadd.f32 %v2510_v43, %v5632_v7 }
 0xbf6   : > { %v2525_v46 = vsel %vm967_vm1, %v5819_v44, 0.0 }
 0xbf7   : > { %2526 = vadd.xlane.f32.xlu1 %v2525_v46  ;;  %v2522_v47 = vsel %vm967_vm1, %v5822_v45, 0.0 }
 0xbf8   : > { %2523 = vadd.xlane.f32.xlu0 %v2522_v47 }
 0xbf9   : > { %v5085_v39 = vpop.f32.mrb[16].mxu0 }
 0xbfa   : > { %v5883_v40 = vadd.f32 %v5085_v39, %v4804_v38  ;;  %v2757_v41 = vpop.f32.mrb[17].mxu0 }
 0xbfb   : > { %v5885_v42 = vadd.f32 %v4804_v38, %v2757_v41 }
 0xc84   : > { %v2527_v48 = vpop.xlane.xlu1 %2526 }
 0xc85   : > { %v5828_v49 = vmul.f32 0.03125, %v2527_v48  ;;  %v2524_v8 = vpop.xlane.xlu0 %2523 }
 0xc86   : > { %v2529_v7 = vmul.f32 0.03125, %v2524_v8 }
 0xc87   : > { %v2532_v50 = vsub.f32 %v5819_v44, %v5828_v49 }
 0xc88   : > { %v2531_v51 = vsub.f32 %v5822_v45, %v2529_v7 }
 0xc89   : > { %v2534_v53 = vmul.f32 %v2532_v50, %v2532_v50 }
 0xc8a   : > { %v2533_v17 = vmul.f32 %v2531_v51, %v2531_v51  ;;  %v5919_v51 = vld [vmem:[%s6227_s1 + $0x8] sm:$0xff] }
 0xc8b   : > { %v2538_v54 = vsel %vm967_vm1, %v2534_v53, 0.0 }
 0xc8c   : > { %v2535_v52 = vsel %vm967_vm1, %v2533_v17, 0.0 }
 0xc8d   : > { %2536 = vadd.xlane.f32.xlu0 %v2535_v52 }
 0xc91   : > { %2539 = vadd.xlane.f32.xlu0 %v2538_v54 }
 0xd1a   : > { %v2537_v5 = vpop.xlane.xlu0 %2536 }
 0xd1b   : > { %v2542_v14 = vmul.f32 0.032258064, %v2537_v5 }
 0xd1d   : > { %5327 = vrsqrt.f32 %v2542_v14  ;;  %vm2546_vm7 = vcmp.eq.f32.partialorder %v2542_v14, inf  ;;  %v2549_v13 = vand.u32 2147483648, %v2542_v14  ;;  %vm2548_vm8 = vcmp.eq.f32.partialorder %v2542_v14, 0.0 }
 0xd1e   : > { %v2540_v6 = vpop.xlane.xlu0 %2539 }
 0xd1f   : > { %v2543_v9 = vmul.f32 0.032258064, %v2540_v6 }
 0xd21   : > { %5329 = vrsqrt.f32 %v2543_v9  ;;  %vm2553_vm9 = vcmp.eq.f32.partialorder %v2543_v9, inf  ;;  %v2556_v23 = vand.u32 2147483648, %v2543_v9  ;;  %vm2555_vm10 = vcmp.eq.f32.partialorder %v2543_v9, 0.0 }
 0xd27   : > { %v5328_v11 = vpop.eup %5327 }
 0xd28   : > { %v2545_v12 = vmul.f32 %v5328_v11, %v2542_v14 }
 0xd2a   : > { %v2547_v16 = vsel %vm2546_vm7, %v2542_v14, %v2545_v12 }
 0xd2b   : > { %v5330_v18 = vpop.eup %5329  ;;  %v2550_v20 = vsel %vm2548_vm8, %v2549_v13, %v2547_v16 }
 0xd2c   : > { %v2558_v21 = vadd.f32 1e-09, %v2550_v20  ;;  %v2552_v22 = vmul.f32 %v5330_v18, %v2543_v9 }
 0xd2e   : > { %5331 = vrcp.f32 %v2558_v21  ;;  %v2554_v24 = vsel %vm2553_vm9, %v2543_v9, %v2552_v22 }
 0xd2f   : > { %v2557_v15 = vsel %vm2555_vm10, %v2556_v23, %v2554_v24 }
 0xd30   : > { %v2559_v25 = vadd.f32 1e-09, %v2557_v15 }
 0xd32   : > { %5333 = vrcp.f32 %v2559_v25 }
 0xd38   : > { %v5332_v26 = vpop.eup %5331 }
 0xd39   : > { %v2561_v27 = vmul.f32 %v5332_v26, %v2529_v7 }
 0xd3b   : > { %v2564_v29 = vsub.f32 %v5822_v45, %v2561_v27 }
 0xd3c   : > { %v5334_v30 = vpop.eup %5333 }
 0xd3d   : > { %v2563_v32 = vmul.f32 %v5334_v30, %v5828_v49  ;;  %v2572_v33 = vmul.f32 %v4799_v28, %v2564_v29  ;;  %v5913_v49 = vld [vmem:[%s6227_s1] sm:$0xff] }
 0xd3f   : > { %v2565_v34 = vsub.f32 %v5819_v44, %v2563_v32  ;;  %v5868_v35 = vadd.f32 %v4800_v31, %v2572_v33 }
 0xd41   : > { %v2573_v36 = vmul.f32 %v4799_v28, %v2565_v34  ;;  %5072 = vmatprep.mubr.msk.f32.mxu1 %vm967_vm1, %v5868_v35 }
 0xd43   : > { %v5872_v37 = vadd.f32 %v4800_v31, %v2573_v36 }
 0xd45   : > { %5073 = vmatmul.mubr.msk.f32.vlgmr.msra.gmra.mrb[20].mxu1 %vm967_vm1, %v5872_v37 }
 0xd46   : > { %5088 = vmatprep.mubr.msk.f32.mxu1 %vm5392_vm2, %v5391_v10  ;;  %5087 = vmatpush3.xpose.msk.msra.mxu1 %vm1071_vm3, %v5885_v42 }
 0xd47   : > { %5091 = vmatprep.subr.mxu1 %v5391_v10 }
 0xe18   : > { %v5074_v43 = vpop.f32.mrb[20].mxu1 }
 0xe19   : > { %v2665_v44 = vpop.f32.mrb[21].mxu1  ;;  %v2671_v46 = vadd.f32 %v5074_v43, %v4801_v19 }
 0xe1a   : > { %v2666_v45 = vadd.f32 %v4801_v19, %v2665_v44 }
 0xe1b   : > { %v5903_v48 = vmul.f32 0.35355338, %v2671_v46 }
 0xe1c   : > { %v5895_v47 = vmul.f32 0.35355338, %v2666_v45 }
 0xe1e   : > { %5089 = vmatmul.mubr.msk.f32.vlgmr.msra.gmra.mrb[22].mxu1 %vm1071_vm3, %v5895_v47 }
 0xe1f   : > { %5092 = vmatpush3.xpose.msk.msra.mxu1 %vm1071_vm3, %v5883_v40  ;;  %5093 = vmatprep.mubr.msk.f32.mxu1 %vm5392_vm2, %v5391_v10 }
 0xe20   : > { %5101 = vmatprep.subr.mxu1 %v5391_v10 }
 0xe22   : > { %5094 = vmatmul.mubr.msk.f32.vlgmr.msra.gmra.mrb[24].mxu1 %vm1071_vm3, %v5903_v48 }
 0xe23   : > { %5103 = vmatprep.mubr.msk.f32.mxu1 %vm5392_vm2, %v5391_v10 }
 0xef1   : > { %v2840_v8 = vpop.f32.mrb[22].mxu1 }
 0xef2   : > { %v2841_v7 = vadd.f32 %v2840_v8, %v5913_v49  ;;  %v5090_v50 = vpop.f32.mrb[23].mxu1 }
 0xef4   : > { %v2920_v17 = vsel %vm1071_vm3, %v2841_v7, -inf }
 0xef5   : > { %2921 = vmax.xlane.f32.xlu1 %v2920_v17  ;;  %v2916_v52 = vpop.f32.mrb[24].mxu1 }
 0xef6   : > { %v2917_v53 = vadd.f32 %v2916_v52, %v5919_v51  ;;  %v5095_v54 = vpop.f32.mrb[25].mxu1 }
 0xef8   : > { %v2923_v55 = vsel %vm1071_vm3, %v2917_v53, -inf }
 0xef9   : > { %2924 = vmax.xlane.f32.xlu0 %v2923_v55 }
 0xf06   : > { %2942 = vrot.lane.b32.xlu1 %v5885_v42, %s5393_s21 }
 0xf0a   : > { %3098 = vrot.lane.b32.xlu1 %v5885_v42, %s5396_s27 }
 0xf0e   : > { %3176 = vrot.lane.b32.xlu1 %v5883_v40, %s5396_s27 }
 0xf0f   : > { %3018 = vrot.lane.b32.xlu0 %v5883_v40, %s5393_s21 }
 0xf82   : > { %v2922_v56 = vpop.xlane.xlu1 %2921 }
 0xf83   : > { %v2926_v57 = vsub.f32 %v2841_v7, %v2922_v56 }
 0xf85   : > { %v2928_v58 = vmul.f32 1.442695, %v2926_v57 }
 0xf86   : > { %v2943_v59 = vpop.permute.xlu1 %2942  ;;  %v2925_v60 = vpop.xlane.xlu0 %2924 }
 0xf87   : > { %5335 = vpow2.f32 %v2928_v58  ;;  %v2927_v61 = vsub.f32 %v2917_v53, %v2925_v60  ;;  %5097 = vmatpush3.msra.mxu0 %v2943_v59 }
 0xf88   : > { %5106 = vmatprep.subr.mxu0 %v5391_v10 }
 0xf89   : > { %v2930_v62 = vmul.f32 1.442695, %v2927_v61 }
 0xf8a   : > { %v3019_v63 = vpop.permute.xlu0 %3018  ;;  %v3099_v4 = vpop.permute.xlu1 %3098 }
 0xf8b   : > { %5337 = vpow2.f32 %v2930_v62  ;;  %5102 = vmatpush3.msra.mxu1 %v3019_v63 }
 0xf8c   : > { %5111 = vmatprep.subr.mxu1 %v5391_v10 }
 0xf8e   : > { %v3177_v5 = vpop.permute.xlu1 %3176 }
 0xf91   : > { %v5336_v0 = vpop.eup %5335 }
 0xf92   : > { %v2932_v1 = vsel %vm1071_vm3, %v5336_v0, 0.0 }
 0xf93   : > { %2933 = vadd.xlane.f32.xlu1 %v2932_v1 }
 0xf95   : > { %v5338_v2 = vpop.eup %5337 }
 0xf96   : > { %v2935_v3 = vsel %vm1071_vm3, %v5338_v2, 0.0 }
 0xf97   : > { %2936 = vadd.xlane.f32.xlu0 %v2935_v3 }
 0xfa4   : > { %3174 = vrot.lane.b32.xlu1 %v5903_v48, %s5396_s27 }
 0xfad   : > { %3096 = vrot.lane.b32.xlu0 %v5895_v47, %s5396_s27 }
0x1020   : > { %v2934_v14 = vpop.xlane.xlu1 %2933 }
0x1021   : > { %5339 = vrcp.f32 %v2934_v14 }
0x1024   : > { %v2937_v6 = vpop.xlane.xlu0 %2936  ;;  %v3175_v18 = vpop.permute.xlu1 %3174 }
0x1025   : > { %5341 = vrcp.f32 %v2937_v6 }
0x1028   : > { %v3097_v16 = vpop.permute.xlu0 %3096 }
0x102b   : > { %v5340_v9 = vpop.eup %5339 }
0x102c   : > { %v2940_v11 = vmul.f32 %v5340_v9, %v5336_v0 }
0x102e   : > { %5099 = vmatmul.mubr.msk.f32.vlgmr.msra.gmra.mrb[18].mxu0 %vm1071_vm3, %v2940_v11 }
0x102f   : > { %v5342_v12 = vpop.eup %5341  ;;  %5107 = vmatpush3.xpose.msk.msra.mxu0 %vm1071_vm3, %v3099_v4  ;;  %5108 = vmatprep.mubr.msk.f32.mxu0 %vm5392_vm2, %v5391_v10 }
0x1030   : > { %v2941_v13 = vmul.f32 %v5342_v12, %v5338_v2  ;;  %5116 = vmatprep.subr.mxu0 %v5391_v10 }
0x1032   : > { %5104 = vmatmul.mubr.msk.f32.vlgmr.msra.gmra.mrb[26].mxu1 %vm1071_vm3, %v2941_v13  ;;  %5109 = vmatmul.mubr.msk.f32.vlgmr.msra.gmra.mrb[20].mxu0 %vm1071_vm3, %v3097_v16 }
0x1033   : > { %5112 = vmatpush3.xpose.msk.msra.mxu1 %vm1071_vm3, %v3177_v5  ;;  %5113 = vmatprep.mubr.msk.f32.mxu1 %vm5392_vm2, %v5391_v10 }
0x1034   : > { %5121 = vmatprep.subr.mxu1 %v5391_v10  ;;  %5118 = vmatprep.mubr.msk.f32.mxu0 %vm5392_vm2, %v5391_v10 }
0x1036   : > { %5114 = vmatmul.mubr.msk.f32.vlgmr.msra.gmra.mrb[28].mxu1 %vm1071_vm3, %v3175_v18 }
0x1037   : > { %5123 = vmatprep.mubr.msk.f32.mxu1 %vm5392_vm2, %v5391_v10 }
0x1101   : > { %v3014_v20 = vpop.f32.mrb[18].mxu0 }
0x1102   : > { %3094 = vst.msk [vmem:[#allocation3] sm:$0xff] %vm1071_vm3, %v3014_v20  ;;  %v5100_v21 = vpop.f32.mrb[19].mxu0 }
0x1105   : > { %v3090_v22 = vpop.f32.mrb[26].mxu1  ;;  %v3170_v23 = vpop.f32.mrb[20].mxu0 }
0x1106   : > { %3095 = vst.msk [vmem:[#allocation3 + $0x8] sm:$0xff] %vm1071_vm3, %v3090_v22  ;;  %v3171_v24 = vadd.f32 %v3170_v23, %v5913_v49  ;;  %v5105_v15 = vpop.f32.mrb[27].mxu1  ;;  %v5110_v25 = vpop.f32.mrb[21].mxu0 }
0x1108   : > { %v3252_v26 = vsel %vm1071_vm3, %v3171_v24, -inf }
0x1109   : > { %3253 = vmax.xlane.f32.xlu0 %v3252_v26  ;;  %v3248_v27 = vpop.f32.mrb[28].mxu1 }
0x110a   : > { %v3249_v28 = vadd.f32 %v3248_v27, %v5919_v51  ;;  %v5115_v29 = vpop.f32.mrb[29].mxu1 }
0x110c   : > { %v3255_v30 = vsel %vm1071_vm3, %v3249_v28, -inf }
0x110d   : > { %3256 = vmax.xlane.f32.xlu1 %v3255_v30 }
0x111e   : > { %3274 = vrot.lane.b32.xlu1 %v5885_v42, %s5395_s2 }
0x111f   : > { %3350 = vrot.lane.b32.xlu0 %v5883_v40, %s5395_s2  ;;  %s6228_s2 = sld [smem:[#allocation17_spill]] }
0x1122   : > { %3438 = vrot.lane.b32.xlu1 %v5885_v42, %s5399_s30 }
0x1125   : > { %s6229_s27 = scalar_lea.vmem %s6228_s2, %s5534_s29 }
0x1126   : > { %3516 = vrot.lane.b32.xlu1 %v5883_v40, %s5399_s30 }
0x112a   : > { %3514 = vrot.lane.b32.xlu1 %v5903_v48, %s5399_s30 }
0x1196   : > { %v3254_v31 = vpop.xlane.xlu0 %3253 }
0x1197   : > { %v3258_v32 = vsub.f32 %v3171_v24, %v3254_v31 }
0x1199   : > { %v3260_v33 = vmul.f32 1.442695, %v3258_v32 }
0x119a   : > { %v3351_v34 = vpop.permute.xlu0 %3350  ;;  %v3257_v36 = vpop.xlane.xlu1 %3256 }
0x119b   : > { %5343 = vpow2.f32 %v3260_v33  ;;  %v3259_v38 = vsub.f32 %v3249_v28, %v3257_v36  ;;  %5122 = vmatpush3.msra.mxu1 %v3351_v34 }
0x119c   : > { %5131 = vmatprep.subr.mxu1 %v5391_v10 }
0x119d   : > { %v3262_v39 = vmul.f32 1.442695, %v3259_v38 }
0x119e   : > { %v3275_v41 = vpop.permute.xlu1 %3274 }
0x119f   : > { %5345 = vpow2.f32 %v3262_v39  ;;  %5117 = vmatpush3.msra.mxu0 %v3275_v41 }
0x11a0   : > { %5126 = vmatprep.subr.mxu0 %v5391_v10 }
0x11a2   : > { %v3439_v7 = vpop.permute.xlu1 %3438 }
0x11a5   : > { %v5344_v19 = vpop.eup %5343 }
0x11a6   : > { %v3264_v43 = vsel %vm1071_vm3, %v5344_v19, 0.0  ;;  %v3517_v53 = vpop.permute.xlu1 %3516 }
0x11a7   : > { %3265 = vadd.xlane.f32.xlu0 %v3264_v43 }
0x11a9   : > { %v5346_v44 = vpop.eup %5345 }
0x11aa   : > { %v3267_v45 = vsel %vm1071_vm3, %v5346_v44, 0.0  ;;  %v3515_v56 = vpop.permute.xlu1 %3514 }
0x11ab   : > { %3268 = vadd.xlane.f32.xlu0 %v3267_v45 }
0x11c1   : > { %3436 = vrot.lane.b32.xlu0 %v5895_v47, %s5399_s30  ;;  %s6230_s30 = scalar_lea.vmem %s6169_s15, %s5534_s29 }
0x1234   : > { %v3266_v46 = vpop.xlane.xlu0 %3265 }
0x1235   : > { %5347 = vrcp.f32 %v3266_v46 }
0x1238   : > { %v3269_v8 = vpop.xlane.xlu0 %3268 }
0x1239   : > { %5349 = vrcp.f32 %v3269_v8 }
0x123c   : > { %v3437_v55 = vpop.permute.xlu0 %3436 }
0x123f   : > { %v5348_v50 = vpop.eup %5347 }
0x1240   : > { %v3272_v17 = vmul.f32 %v5348_v50, %v5344_v19 }
0x1242   : > { %5119 = vmatmul.mubr.msk.f32.vlgmr.msra.gmra.mrb[22].mxu0 %vm1071_vm3, %v3272_v17 }
0x1243   : > { %v5350_v52 = vpop.eup %5349  ;;  %5127 = vmatpush3.xpose.msk.msra.mxu0 %vm1071_vm3, %v3439_v7  ;;  %5128 = vmatprep.mubr.msk.f32.mxu0 %vm5392_vm2, %v5391_v10 }
0x1244   : > { %v3273_v54 = vmul.f32 %v5350_v52, %v5346_v44  ;;  %5136 = vmatprep.subr.mxu0 %v5391_v10 }
0x1246   : > { %5124 = vmatmul.mubr.msk.f32.vlgmr.msra.gmra.mrb[30].mxu1 %vm1071_vm3, %v3273_v54  ;;  %5129 = vmatmul.mubr.msk.f32.vlgmr.msra.gmra.mrb[24].mxu0 %vm1071_vm3, %v3437_v55 }
0x1247   : > { %5132 = vmatpush3.xpose.msk.msra.mxu1 %vm1071_vm3, %v3517_v53  ;;  %5133 = vmatprep.mubr.msk.f32.mxu1 %vm5392_vm2, %v5391_v10 }
0x1248   : > { %5141 = vmatprep.subr.mxu1 %v5391_v10  ;;  %5138 = vmatprep.mubr.msk.f32.mxu0 %vm5392_vm2, %v5391_v10 }
0x124a   : > { %5134 = vmatmul.mubr.msk.f32.vlgmr.msra.gmra.mrb[32].mxu1 %vm1071_vm3, %v3515_v56 }
0x124b   : > { %5143 = vmatprep.mubr.msk.f32.mxu1 %vm5392_vm2, %v5391_v10 }
0x1315   : > { %v5994_v57 = vpop.f32.mrb[22].mxu0 }
0x1316   : > { %v5120_v58 = vpop.f32.mrb[23].mxu0 }
0x1319   : > { %v5996_v59 = vpop.f32.mrb[30].mxu1  ;;  %v3510_v60 = vpop.f32.mrb[24].mxu0 }
0x131a   : > { %v3511_v61 = vadd.f32 %v3510_v60, %v5913_v49  ;;  %v5125_v62 = vpop.f32.mrb[31].mxu1  ;;  %v5130_v63 = vpop.f32.mrb[25].mxu0 }
0x131b   : > { %v4118_v63 = vld [vmem:[%s5584_s24] sm:$0xff] }
0x131c   : > { %v3592_v0 = vsel %vm1071_vm3, %v3511_v61, -inf }
0x131d   : > { %3593 = vmax.xlane.f32.xlu0 %v3592_v0  ;;  %v3588_v1 = vpop.f32.mrb[32].mxu1  ;;  %v4119_v0 = vld [vmem:[%s5584_s24 + $0x8] sm:$0xff] }
0x131e   : > { %v3589_v2 = vadd.f32 %v3588_v1, %v5919_v51  ;;  %v5135_v3 = vpop.f32.mrb[33].mxu1  ;;  %v5239_v1 = vpack.c.bf16 %v4119_v0, %v4118_v63 }
0x131f   : > { %v4121_v3 = vld [vmem:[%s5584_s24 + $0x18] sm:$0xff] }
0x1320   : > { %v3595_v4 = vsel %vm1071_vm3, %v3589_v2, -inf }
0x1321   : > { %3596 = vmax.xlane.f32.xlu1 %v3595_v4 }
0x1332   : > { %3614 = vrot.lane.b32.xlu1 %v5885_v42, %s5398_s10 }
0x1333   : > { %3690 = vrot.lane.b32.xlu0 %v5883_v40, %s5398_s10 }
0x1336   : > { %3778 = vrot.lane.b32.xlu1 %v5885_v42, %s5402_s5 }
0x133a   : > { %3856 = vrot.lane.b32.xlu1 %v5883_v40, %s5402_s5 }
0x133e   : > { %3854 = vrot.lane.b32.xlu1 %v5903_v48, %s5402_s5 }
0x13aa   : > { %v3594_v5 = vpop.xlane.xlu0 %3593 }
0x13ab   : > { %v3598_v14 = vsub.f32 %v3511_v61, %v3594_v5 }
0x13ad   : > { %v3600_v6 = vmul.f32 1.442695, %v3598_v14 }
0x13ae   : > { %v3691_v9 = vpop.permute.xlu0 %3690  ;;  %v3597_v11 = vpop.xlane.xlu1 %3596 }
0x13af   : > { %5351 = vpow2.f32 %v3600_v6  ;;  %v3599_v12 = vsub.f32 %v3589_v2, %v3597_v11  ;;  %5142 = vmatpush3.msra.mxu1 %v3691_v9  ;;  %v4120_v2 = vld [vmem:[%s5584_s24 + $0x10] sm:$0xff] }
0x13b0   : > { %5151 = vmatprep.subr.mxu1 %v5391_v10  ;;  %v5243_v4 = vpack.c.bf16 %v4121_v3, %v4120_v2 }
0x13b1   : > { %v3602_v13 = vmul.f32 1.442695, %v3599_v12 }
0x13b2   : > { %v3615_v16 = vpop.permute.xlu1 %3614 }
0x13b3   : > { %5353 = vpow2.f32 %v3602_v13  ;;  %5137 = vmatpush3.msra.mxu0 %v3615_v16 }
0x13b4   : > { %5146 = vmatprep.subr.mxu0 %v5391_v10 }
0x13b6   : > { %v3779_v24 = vpop.permute.xlu1 %3778 }
0x13b9   : > { %v5352_v18 = vpop.eup %5351 }
0x13ba   : > { %v3604_v20 = vsel %vm1071_vm3, %v5352_v18, 0.0  ;;  %v3857_v27 = vpop.permute.xlu1 %3856 }
0x13bb   : > { %3605 = vadd.xlane.f32.xlu0 %v3604_v20 }
0x13bd   : > { %v5354_v48 = vpop.eup %5353 }
0x13be   : > { %v3607_v21 = vsel %vm1071_vm3, %v5354_v48, 0.0  ;;  %v3855_v29 = vpop.permute.xlu1 %3854 }
0x13bf   : > { %3608 = vadd.xlane.f32.xlu0 %v3607_v21 }
0x13d5   : > { %3776 = vrot.lane.b32.xlu0 %v5895_v47, %s5402_s5 }
0x1448   : > { %v3606_v22 = vpop.xlane.xlu0 %3605 }
0x1449   : > { %5355 = vrcp.f32 %v3606_v22 }
0x144c   : > { %v3609_v23 = vpop.xlane.xlu0 %3608 }
0x144d   : > { %5357 = vrcp.f32 %v3609_v23 }
0x1450   : > { %v3777_v47 = vpop.permute.xlu0 %3776 }
0x1453   : > { %v5356_v15 = vpop.eup %5355 }
0x1454   : > { %v3612_v25 = vmul.f32 %v5356_v15, %v5352_v18  ;;  %v4831_v18 = vld [vmem:[%s6229_s27] ss:$0 sm:$0xff] }
0x1456   : > { %5139 = vmatmul.mubr.msk.f32.vlgmr.msra.gmra.mrb[26].mxu0 %vm1071_vm3, %v3612_v25 }
0x1457   : > { %v5358_v26 = vpop.eup %5357  ;;  %5147 = vmatpush3.xpose.msk.msra.mxu0 %vm1071_vm3, %v3779_v24  ;;  %5148 = vmatprep.mubr.msk.f32.mxu0 %vm5392_vm2, %v5391_v10 }
0x1458   : > { %v3613_v28 = vmul.f32 %v5358_v26, %v5354_v48  ;;  %5156 = vmatprep.subr.mxu0 %v5391_v10 }
0x145a   : > { %5144 = vmatmul.mubr.msk.f32.vlgmr.msra.gmra.mrb[34].mxu1 %vm1071_vm3, %v3613_v28  ;;  %5149 = vmatmul.mubr.msk.f32.vlgmr.msra.gmra.mrb[28].mxu0 %vm1071_vm3, %v3777_v47 }
0x145b   : > { %5152 = vmatpush3.xpose.msk.msra.mxu1 %vm1071_vm3, %v3857_v27  ;;  %5153 = vmatprep.mubr.msk.f32.mxu1 %vm5392_vm2, %v5391_v10 }
0x145c   : > { %5161 = vmatprep.subr.mxu1 %v5391_v10  ;;  %5158 = vmatprep.mubr.msk.f32.mxu0 %vm5392_vm2, %v5391_v10 }
0x145e   : > { %5154 = vmatmul.mubr.msk.f32.vlgmr.msra.gmra.mrb[36].mxu1 %vm1071_vm3, %v3855_v29 }
0x145f   : > { %5163 = vmatprep.mubr.msk.f32.mxu1 %vm5392_vm2, %v5391_v10 }
0x1529   : > { %v3686_v30 = vpop.f32.mrb[26].mxu0 }
0x152a   : > { %v5140_v31 = vpop.f32.mrb[27].mxu0 }
0x152d   : > { %v3762_v32 = vpop.f32.mrb[34].mxu1  ;;  %v3850_v33 = vpop.f32.mrb[28].mxu0 }
0x152e   : > { %v3851_v34 = vadd.f32 %v3850_v33, %v5913_v49  ;;  %v5145_v36 = vpop.f32.mrb[35].mxu1  ;;  %v5150_v38 = vpop.f32.mrb[29].mxu0  ;;  %v4272_v33 = vld [vmem:[%s5601_s4] sm:$0xff] }
0x152f   : > { %v4274_v36 = vld [vmem:[%s5601_s4 + $0x10] sm:$0xff] }
0x1530   : > { %v3932_v39 = vsel %vm1071_vm3, %v3851_v34, -inf }
0x1531   : > { %3933 = vmax.xlane.f32.xlu0 %v3932_v39  ;;  %v3928_v41 = vpop.f32.mrb[36].mxu1  ;;  %v4275_v39 = vld [vmem:[%s5601_s4 + $0x18] sm:$0xff] }
0x1532   : > { %v3929_v19 = vadd.f32 %v3928_v41, %v5919_v51  ;;  %v5155_v43 = vpop.f32.mrb[37].mxu1  ;;  %v5251_v41 = vpack.c.bf16 %v4275_v39, %v4274_v36 }
0x1533   : > { %v4367_v43 = vld [vmem:[%s5611_s14 + $0x8] sm:$0xff] }
0x1534   : > { %v3935_v44 = vsel %vm1071_vm3, %v3929_v19, -inf }
0x1535   : > { %3936 = vmax.xlane.f32.xlu1 %v3935_v44  ;;  %v4368_v44 = vld [vmem:[%s5611_s14 + $0x10] sm:$0xff] }
0x1546   : > { %3954 = vrot.lane.b32.xlu1 %v5885_v42, %s5401_s23 }
0x154a   : > { %3428 = vrot.lane.b32.xlu1 %v5994_v57, %s5404_s9 }
0x154e   : > { %3430 = vrot.lane.b32.xlu1 %v5996_v59, %s5404_s9  ;;  %s6231_s9 = sld [smem:[#allocation18_spill]] }
0x1552   : > { %3770 = vrot.lane.b32.xlu1 %v3762_v32, %s5405_s11 }
0x15be   : > { %v3934_v10 = vpop.xlane.xlu0 %3933 }
0x15bf   : > { %v3938_v49 = vsub.f32 %v3851_v34, %v3934_v10  ;;  %v4273_v34 = vld [vmem:[%s5601_s4 + $0x8] sm:$0xff] }
0x15c0   : > { %v5247_v38 = vpack.c.bf16 %v4273_v34, %v4272_v33 }
0x15c1   : > { %v3940_v45 = vmul.f32 1.442695, %v3938_v49  ;;  %v4369_v49 = vld [vmem:[%s5611_s14 + $0x18] sm:$0xff] }
0x15c2   : > { %v3937_v46 = vpop.xlane.xlu1 %3936 }
0x15c3   : > { %5359 = vpow2.f32 %v3940_v45  ;;  %v3939_v51 = vsub.f32 %v3929_v19, %v3937_v46  ;;  %v4366_v19 = vld [vmem:[%s5611_s14] sm:$0xff]  ;;  %v5259_v45 = vpack.c.bf16 %v4369_v49, %v4368_v44 }
0x15c4   : > { %v5255_v10 = vpack.c.bf16 %v4367_v43, %v4366_v19  ;;  %v4370_v46 = vld [vmem:[%s5611_s14 + $0x20] sm:$0xff] }
0x15c5   : > { %v3942_v8 = vmul.f32 1.442695, %v3939_v51  ;;  %v4371_v51 = vld [vmem:[%s5611_s14 + $0x28] sm:$0xff] }
0x15c6   : > { %v3955_v7 = vpop.permute.xlu1 %3954 }
0x15c7   : > { %5361 = vpow2.f32 %v3942_v8  ;;  %5157 = vmatpush3.msra.mxu0 %v3955_v7  ;;  %v5263_v8 = vpack.c.bf16 %v4371_v51, %v4370_v46 }
0x15c8   : > { %5240 = vmatprep.subr.bf16.mxu0 %v5239_v1 }
0x15ca   : > { %v3429_v50 = vpop.permute.xlu1 %3428 }
0x15cb   : > { %3434 = vst.msk [vmem:[#allocation3] sm:$0xff] %vm1739_vm4, %v3429_v50 }
0x15cd   : > { %v5360_v42 = vpop.eup %5359 }
0x15ce   : > { %v3431_v17 = vpop.permute.xlu1 %3430  ;;  %v3944_v52 = vsel %vm1071_vm3, %v5360_v42, 0.0 }
0x15cf   : > { %3435 = vst.msk [vmem:[#allocation3 + $0x8] sm:$0xff] %vm1739_vm4, %v3431_v17  ;;  %3945 = vadd.xlane.f32.xlu0 %v3944_v52 }
0x15d1   : > { %v5362_v53 = vpop.eup %5361 }
0x15d2   : > { %v3771_v54 = vpop.permute.xlu1 %3770  ;;  %v3947_v55 = vsel %vm1071_vm3, %v5362_v53, 0.0 }
0x15d3   : > { %3775 = vst.msk [vmem:[#allocation3 + $0x8] sm:$0xff] %vm2080_vm5, %v3771_v54  ;;  %3948 = vadd.xlane.f32.xlu0 %v3947_v55 }
0x15e9   : > { %4030 = vrot.lane.b32.xlu0 %v5883_v40, %s5401_s23 }
0x15ed   : > { %3768 = vrot.lane.b32.xlu0 %v3686_v30, %s5405_s11  ;;  %s6232_s11 = scalar_lea.vmem %s6231_s9, %s5534_s29 }
0x165c   : > { %v3946_v56 = vpop.xlane.xlu0 %3945 }
0x165d   : > { %5363 = vrcp.f32 %v3946_v56 }
0x1660   : > { %v3949_v57 = vpop.xlane.xlu0 %3948 }
0x1661   : > { %5365 = vrcp.f32 %v3949_v57 }
0x1664   : > { %v4031_v58 = vpop.permute.xlu0 %4030 }
0x1665   : > { %5162 = vmatpush3.msra.mxu1 %v4031_v58 }
0x1666   : > { %5248 = vmatprep.subr.bf16.mxu1 %v5247_v38 }
0x1667   : > { %v5364_v59 = vpop.eup %5363 }
0x1668   : > { %v3952_v60 = vmul.f32 %v5364_v59, %v5360_v42  ;;  %v3769_v61 = vpop.permute.xlu0 %3768 }
0x1669   : > { %3774 = vst.msk [vmem:[#allocation3] sm:$0xff] %vm2080_vm5, %v3769_v61 }
0x166a   : > { %5159 = vmatmul.mubr.msk.f32.vlgmr.msra.gmra.mrb[30].mxu0 %vm1071_vm3, %v3952_v60 }
0x166b   : > { %v5366_v40 = vpop.eup %5365  ;;  %5242 = vmatpush3.bf16.msra.mxu0 %v5239_v1  ;;  %v6103_v1 = vld [vmem:[%s6230_s30] ss:$0 sm:$0xff] }
0x166c   : > { %v3953_v62 = vmul.f32 %v5366_v40, %v5362_v53  ;;  %5244 = vmatprep.subr.bf16.mxu0 %v5243_v4 }
0x166e   : > { %5164 = vmatmul.mubr.msk.f32.vlgmr.msra.gmra.mrb[38].mxu1 %vm1071_vm3, %v3953_v62 }
0x166f   : > { %5246 = vmatpush3.bf16.msra.mxu0 %v5243_v4  ;;  %5250 = vmatpush3.bf16.msra.mxu1 %v5247_v38  ;;  %v6111_v4 = vld [vmem:[%s6232_s11] ss:$0 sm:$0xff] }
0x1670   : > { %5252 = vmatprep.subr.bf16.mxu1 %v5251_v41  ;;  %5256 = vmatprep.subr.bf16.mxu0 %v5255_v10 }
0x1673   : > { %5254 = vmatpush3.bf16.msra.mxu1 %v5251_v41 }
0x173d   : > { %v4026_v5 = vpop.f32.mrb[30].mxu0 }
0x173e   : > { %4108 = vrot.lane.b32.xlu0 %v4026_v5, %s5406_s13  ;;  %v5160_v14 = vpop.f32.mrb[31].mxu0 }
0x1741   : > { %v4102_v6 = vpop.f32.mrb[38].mxu1 }
0x1742   : > { %4110 = vrot.lane.b32.xlu1 %v4102_v6, %s5406_s13  ;;  %v5165_v9 = vpop.f32.mrb[39].mxu1 }
0x17b0   : > { %v4109_v11 = vpop.permute.xlu0 %4108 }
0x17b1   : > { %4114 = vst.msk [vmem:[#allocation3] sm:$0xff] %vm2421_vm6, %v4109_v11 }
0x17b4   : > { %v4111_v12 = vpop.permute.xlu1 %4110 }
0x17b5   : > { %4115 = vst.msk [vmem:[#allocation3 + $0x8] sm:$0xff] %vm2421_vm6, %v4111_v12 }
0x17b8   : > { %v4116_v13 = vld [vmem:[#allocation3] sm:$0xff] }
0x17b9   : > { %5174 = vmatprep.mubr.msk.f32.mxu0 %vm967_vm1, %v4116_v13  ;;  %v4372_v13 = vld [vmem:[%s5611_s14 + $0x30] sm:$0xff] }
0x17bc   : > { %v4117_v16 = vld [vmem:[#allocation3 + $0x8] sm:$0xff] }
0x17bd   : > { %5175 = vmatmul.mubr.msk.f32.vlgmr.msra.gmra.mrb[32].mxu0 %vm967_vm1, %v4117_v16  ;;  %v4373_v16 = vld [vmem:[%s5611_s14 + $0x38] sm:$0xff] }
0x17be   : > { %5258 = vmatpush3.bf16.msra.mxu0 %v5255_v10 }
0x17bf   : > { %5260 = vmatprep.subr.bf16.mxu0 %v5259_v45 }
0x17c2   : > { %5262 = vmatpush3.bf16.msra.mxu0 %v5259_v45 }
0x17c3   : > { %5264 = vmatprep.subr.bf16.mxu0 %v5263_v8 }
0x17c6   : > { %5266 = vmatpush3.bf16.msra.mxu0 %v5263_v8 }
0x1890   : > { %v5176_v20 = vpop.f32.mrb[32].mxu0 }
0x1891   : > { %v4207_v48 = vadd.f32 %v5176_v20, %v4831_v18  ;;  %v4201_v21 = vpop.f32.mrb[33].mxu0  ;;  %v4836_v20 = vld [vmem:[%s6233_s6] ss:$0 sm:$0xff] }
0x1892   : > { %v4202_v22 = vadd.f32 %v4831_v18, %v4201_v21  ;;  %v5267_v18 = vpack.c.bf16 %v4373_v16, %v4372_v13 }
0x1893   : > { %v6072_v23 = vadd.f32 %v4207_v48, %v5872_v37 }
0x1894   : > { %v6075_v24 = vadd.f32 %v4202_v22, %v5868_v35  ;;  %5268 = vmatprep.subr.bf16.mxu0 %v5267_v18 }
0x1895   : > { %v4217_v15 = vsel %vm967_vm1, %v6072_v23, 0.0  ;;  %5270 = vmatpush3.bf16.msra.mxu0 %v5267_v18 }
0x1896   : > { %4218 = vadd.xlane.f32.xlu1 %v4217_v15  ;;  %v4214_v25 = vsel %vm967_vm1, %v6075_v24, 0.0 }
0x1897   : > { %4215 = vadd.xlane.f32.xlu0 %v4214_v25  ;;  %v4839_v25 = vld [vmem:[%s950_s28] ss:$0 sm:$0xff] }
0x1923   : > { %v4219_v26 = vpop.xlane.xlu1 %4218 }
0x1924   : > { %v6081_v27 = vmul.f32 0.03125, %v4219_v26  ;;  %v4216_v37 = vpop.xlane.xlu0 %4215 }
0x1925   : > { %v4220_v28 = vmul.f32 0.03125, %v4216_v37 }
0x1926   : > { %v4223_v35 = vsub.f32 %v6072_v23, %v6081_v27 }
0x1927   : > { %v4222_v47 = vsub.f32 %v6075_v24, %v4220_v28 }
0x1928   : > { %v4225_v31 = vmul.f32 %v4223_v35, %v4223_v35 }
0x1929   : > { %v4224_v29 = vmul.f32 %v4222_v47, %v4222_v47 }
0x192a   : > { %v4229_v32 = vsel %vm967_vm1, %v4225_v31, 0.0 }
0x192b   : > { %v4226_v30 = vsel %vm967_vm1, %v4224_v29, 0.0 }
0x192c   : > { %4227 = vadd.xlane.f32.xlu0 %v4226_v30 }
0x1930   : > { %4230 = vadd.xlane.f32.xlu0 %v4229_v32 }
0x19b9   : > { %v4228_v7 = vpop.xlane.xlu0 %4227 }
0x19ba   : > { %v4232_v50 = vmul.f32 0.032258064, %v4228_v7 }
0x19bc   : > { %5367 = vrsqrt.f32 %v4232_v50  ;;  %vm4236_vm11 = vcmp.eq.f32.partialorder %v4232_v50, inf  ;;  %v4239_v54 = vand.u32 2147483648, %v4232_v50  ;;  %vm4238_vm12 = vcmp.eq.f32.partialorder %v4232_v50, 0.0 }
0x19bd   : > { %v4231_v42 = vpop.xlane.xlu0 %4230 }
0x19be   : > { %v4233_v17 = vmul.f32 0.032258064, %v4231_v42 }
0x19c0   : > { %5369 = vrsqrt.f32 %v4233_v17  ;;  %vm4243_vm13 = vcmp.eq.f32.partialorder %v4233_v17, inf  ;;  %v4246_v60 = vand.u32 2147483648, %v4233_v17  ;;  %vm4245_vm14 = vcmp.eq.f32.partialorder %v4233_v17, 0.0 }
0x19c6   : > { %v5368_v52 = vpop.eup %5367 }
0x19c7   : > { %v4235_v53 = vmul.f32 %v5368_v52, %v4232_v50 }
0x19c9   : > { %v4237_v55 = vsel %vm4236_vm11, %v4232_v50, %v4235_v53 }
0x19ca   : > { %v5370_v56 = vpop.eup %5369  ;;  %v4240_v57 = vsel %vm4238_vm12, %v4239_v54, %v4237_v55 }
0x19cb   : > { %v4248_v58 = vadd.f32 1e-09, %v4240_v57  ;;  %v4242_v59 = vmul.f32 %v5370_v56, %v4233_v17 }
0x19cd   : > { %5371 = vrcp.f32 %v4248_v58  ;;  %v4244_v61 = vsel %vm4243_vm13, %v4233_v17, %v4242_v59 }
0x19ce   : > { %v4247_v40 = vsel %vm4245_vm14, %v4246_v60, %v4244_v61 }
0x19cf   : > { %v4249_v62 = vadd.f32 1e-09, %v4247_v40 }
0x19d1   : > { %5373 = vrcp.f32 %v4249_v62 }
0x19d7   : > { %v5372_v63 = vpop.eup %5371 }
0x19d8   : > { %v4251_v0 = vmul.f32 %v5372_v63, %v4220_v28 }
0x19da   : > { %v4254_v2 = vsub.f32 %v6075_v24, %v4251_v0 }
0x19db   : > { %v5374_v3 = vpop.eup %5373 }
0x19dc   : > { %v4262_v5 = vmul.f32 %v6103_v1, %v4254_v2  ;;  %v4253_v14 = vmul.f32 %v5374_v3, %v6081_v27 }
0x19de   : > { %v4270_v6 = vadd.f32 %v6111_v4, %v4262_v5  ;;  %v4255_v9 = vsub.f32 %v6072_v23, %v4253_v14 }
0x19e0   : > { %5185 = vmatprep.mubr.msk.f32.mxu1 %vm967_vm1, %v4270_v6  ;;  %v4263_v11 = vmul.f32 %v6103_v1, %v4255_v9 }
0x19e2   : > { %v4271_v12 = vadd.f32 %v6111_v4, %v4263_v11 }
0x19e4   : > { %5186 = vmatmul.mubr.msk.f32.vlgmr.msra.gmra.mrb[40].mxu1 %vm967_vm1, %v4271_v12 }
0x1ab7   : > { %v5187_v48 = vpop.f32.mrb[40].mxu1 }
0x1ab8   : > { %v4361_v21 = vadd.f32 %v5187_v48, %v4836_v20  ;;  %v4355_v22 = vpop.f32.mrb[41].mxu1 }
0x1ab9   : > { %v4356_v23 = vadd.f32 %v4836_v20, %v4355_v22 }
0x1aba   : > { %v4365_v15 = vmax.f32 %v4361_v21, 0.0 }
0x1abb   : > { %v4364_v24 = vmax.f32 %v4356_v23, 0.0 }
0x1abd   : > { %5204 = vmatprep.mubr.msk.f32.mxu0 %vm4381_vm15, %v4364_v24 }
0x1abe   : > { %5205 = vmatmul.mubr.msk.f32.vlgmr.msra.gmra.mrb[34].mxu0 %vm4381_vm15, %v4365_v15 }
0x1b91   : > { %v5206_v26 = vpop.f32.mrb[34].mxu0 }
0x1b92   : > { %v4460_v27 = vadd.f32 %v5206_v26, %v4839_v25  ;;  %v4454_v37 = vpop.f32.mrb[35].mxu0 }
0x1b93   : > { %v4455_v28 = vadd.f32 %v4839_v25, %v4454_v37 }
0x1b94   : > { %v4464_v35 = vadd.f32 %v4460_v27, %v4271_v12 }
0x1b95   : > { %v4463_v47 = vadd.f32 %v4455_v28, %v4270_v6 }
0x1b96   : > { %v4468_v29 = vsel %vm967_vm1, %v4464_v35, 0.0 }
0x1b97   : > { %4469 = vadd.xlane.f32.xlu0 %v4468_v29  ;;  %v4465_v30 = vsel %vm967_vm1, %v4463_v47, 0.0 }
0x1b98   : > { %4466 = vadd.xlane.f32.xlu1 %v4465_v30 }
0x1c24   : > { %v4470_v31 = vpop.xlane.xlu0 %4469 }
0x1c25   : > { %v4472_v32 = vmul.f32 0.03125, %v4470_v31  ;;  %v4467_v33 = vpop.xlane.xlu1 %4466 }
0x1c26   : > { %v4471_v34 = vmul.f32 0.03125, %v4467_v33 }
0x1c27   : > { %v4474_v36 = vsub.f32 %v4464_v35, %v4472_v32 }
0x1c28   : > { %v4473_v38 = vsub.f32 %v4463_v47, %v4471_v34 }
0x1c29   : > { %v4476_v39 = vmul.f32 %v4474_v36, %v4474_v36 }
0x1c2a   : > { %v4475_v41 = vmul.f32 %v4473_v38, %v4473_v38 }
0x1c2b   : > { %v4480_v19 = vsel %vm967_vm1, %v4476_v39, 0.0 }
0x1c2c   : > { %4481 = vadd.xlane.f32.xlu0 %v4480_v19  ;;  %v4477_v43 = vsel %vm967_vm1, %v4475_v41, 0.0 }
0x1c2d   : > { %4478 = vadd.xlane.f32.xlu1 %v4477_v43 }
0x1cb9   : > { %v4482_v44 = vpop.xlane.xlu0 %4481 }
0x1cba   : > { %v4484_v10 = vmul.f32 0.032258064, %v4482_v44  ;;  %v4479_v49 = vpop.xlane.xlu1 %4478 }
0x1cbb   : > { %v4483_v45 = vmul.f32 0.032258064, %v4479_v49 }
0x1cbc   : > { %5375 = vrsqrt.f32 %v4484_v10  ;;  %vm4494_vm0 = vcmp.eq.f32.partialorder %v4484_v10, inf  ;;  %v4497_v7 = vand.u32 2147483648, %v4484_v10  ;;  %vm4496_vm2 = vcmp.eq.f32.partialorder %v4484_v10, 0.0 }
0x1cbd   : > { %5377 = vrsqrt.f32 %v4483_v45  ;;  %vm4487_vm3 = vcmp.eq.f32.partialorder %v4483_v45, inf  ;;  %v4490_v17 = vand.u32 2147483648, %v4483_v45  ;;  %vm4489_vm4 = vcmp.eq.f32.partialorder %v4483_v45, 0.0 }
0x1cc6   : > { %v5376_v46 = vpop.eup %5375 }
0x1cc7   : > { %v5378_v51 = vpop.eup %5377  ;;  %v4493_v8 = vmul.f32 %v5376_v46, %v4484_v10 }
0x1cc8   : > { %v4486_v50 = vmul.f32 %v5378_v51, %v4483_v45 }
0x1cc9   : > { %v4495_v42 = vsel %vm4494_vm0, %v4484_v10, %v4493_v8 }
0x1cca   : > { %v4498_v52 = vsel %vm4496_vm2, %v4497_v7, %v4495_v42  ;;  %v4488_v53 = vsel %vm4487_vm3, %v4483_v45, %v4486_v50 }
0x1ccb   : > { %v4500_v54 = vadd.f32 1e-09, %v4498_v52  ;;  %v4491_v55 = vsel %vm4489_vm4, %v4490_v17, %v4488_v53 }
0x1ccc   : > { %v4499_v56 = vadd.f32 1e-09, %v4491_v55 }
0x1ccd   : > { %5379 = vrcp.f32 %v4500_v54 }
0x1cce   : > { %5381 = vrcp.f32 %v4499_v56 }
0x1cd7   : > { %v5380_v57 = vpop.eup %5379 }
0x1cd8   : > { %v5382_v58 = vpop.eup %5381  ;;  %v4504_v59 = vmul.f32 %v5380_v57, %v4472_v32 }
0x1cd9   : > { %v4502_v60 = vmul.f32 %v5382_v58, %v4471_v34 }
0x1cda   : > { %v4506_v61 = vsub.f32 %v4464_v35, %v4504_v59 }
0x1cdb   : > { %v4505_v40 = vsub.f32 %v4463_v47, %v4502_v60 }
0x1cdc   : > { %v4508_v62 = vmul.f32 %v6103_v1, %v4506_v61 }
0x1cdd   : > { %v4507_v63 = vmul.f32 %v6103_v1, %v4505_v40 }
0x1cde   : > { %v4510_v0 = vadd.f32 %v6111_v4, %v4508_v62 }
0x1cdf   : > { %v4509_v2 = vadd.f32 %v6111_v4, %v4507_v63 }
0x1ce0   : > { %4512 = vst.msk [vmem:[#allocation2 + $0x8] sm:$0xff] %vm967_vm1, %v4510_v0  ;;  %4514 = vst.msk [vmem:[%s6235_s26 + $0x8] sm:$0xff] %vm967_vm1, %v4510_v0 }
0x1ce1   : > { %4511 = vst.msk [vmem:[#allocation2] sm:$0xff] %vm967_vm1, %v4509_v2  ;;  %4513 = vst.msk [vmem:[%s6235_s26] sm:$0xff] %vm967_vm1, %v4509_v2 }
0x1ce2 PF: > { %s6236_s24 = sld [smem:[#allocation4_spill]] }
0x1ce8   : > { %s33_s3 = sadd.s32 1, %s6236_s24  }
0x1ce9   : > { %p30_p5 = scmp.ge.s32.totalorder %s33_s3, 4  }
0x1ceb   :  { %32 = sbr.rel (!%p30_p5) target bundleno = 18 (0x12), region = 197 }

</bundles_post_ra>
